<compile_context>
chip_gen: v7x
topology: tpu7x:2x2x1
jax: 0.10.0
libtpu: 0.0.40
codegen_flags: <defaults>
</compile_context>

<pallas_src>
import functools

import jax
import jax.numpy as jnp
from jax.experimental import pallas as pl
from jax.experimental.pallas import tpu as pltpu

B, T, D = 2, 16, 32        # batch, seq len, d_model (= self.size)
H = 4                      # attention heads
DK = D // H                # per-head dim
DFF = 64                   # feed-forward hidden dim
K = 11                     # FSMN kernel size
PAD_L = (K - 1) // 2       # ConstantPad1d left
PAD_R = K - 1 - PAD_L      # ConstantPad1d right
EPS = 1e-5                 # torch.nn.LayerNorm default eps

FSMN_OFF = 8                                           # 8-aligned store offset
FSMN_ROWS = ((FSMN_OFF + T + PAD_R + 7) // 8) * 8      # padded scratch rows


def _layernorm(x, g, b):
    mu = jnp.mean(x, axis=-1, keepdims=True)
    var = jnp.mean((x - mu) ** 2, axis=-1, keepdims=True)
    return (x - mu) * jax.lax.rsqrt(var + EPS) * g + b


def _encoder_kernel(bb,
                    x_ref, mcol_ref, amask_ref,
                    n1g_ref, n1b_ref,
                    wq_ref, wk_ref, wv_ref, bq_ref, bk_ref, bv_ref,
                    fsmn_ref, wo_ref, bo_ref,
                    n2g_ref, n2b_ref, w1_ref, b1_ref, w2_ref, b2_ref,
                    out_ref, pad_ref, x1_ref):
    bf16 = jnp.bfloat16
    f32 = jnp.float32

    x = x_ref[...]                           # (bb*T, D) f32
    mcol = mcol_ref[...]                     # (bb*T, 1) multiplicative pad mask

    # ---------------- norm1 + Q/K/V projection over the whole slab ----------------
    xn = _layernorm(x, n1g_ref[...], n1b_ref[...])
    xnb = xn.astype(bf16)
    scale = float(DK) ** -0.5
    q = (jnp.dot(xnb, wq_ref[...], preferred_element_type=f32)
         + bq_ref[...]) * scale              # scale once for the whole slab
    k = jnp.dot(xnb, wk_ref[...], preferred_element_type=f32) + bk_ref[...]
    v = jnp.dot(xnb, wv_ref[...], preferred_element_type=f32) + bv_ref[...]
    v_m = v * mcol                           # masked values for the FSMN branch

    # zero the FSMN scratch once; data rows get overwritten per batch element
    pad_ref[...] = jnp.zeros_like(pad_ref)

    for b in range(bb):                      # static loop (bb is 1 or B)
        r0 = b * T
        x_b = x[r0:r0 + T, :]
        mcol_b = mcol[r0:r0 + T, :]
        v_m_b = v_m[r0:r0 + T, :]
        amask_b = amask_ref[b]               # (1, T) additive attention mask

        # ---- FSMN memory: depthwise conv via zero-padded VMEM scratch ----
        pad_ref[FSMN_OFF:FSMN_OFF + T, :] = v_m_b
        acc = v_m_b                          # the "+ inputs" residual inside FSMN
        for kk in range(K):
            off = FSMN_OFF - PAD_L + kk      # static sublane offset, 3..13
            acc = acc + pad_ref[off:off + T, :] * fsmn_ref[kk:kk + 1, :]
        att_b = acc * mcol_b + bo_ref[...]   # accumulator starts with FSMN memory + bo

        # ---- multi-head attention, output projection fused per head ----
        for h in range(H):
            lo = h * DK
            qh = q[r0:r0 + T, lo:lo + DK]
            kh = k[r0:r0 + T, lo:lo + DK]
            vh = v[r0:r0 + T, lo:lo + DK]
            s = jax.lax.dot_general(qh, kh, (((1,), (1,)), ((), ())),
                                    preferred_element_type=f32) + amask_b
            m = jnp.max(s, axis=-1, keepdims=True)
            e = jnp.exp(s - m)
            p = e / jnp.sum(e, axis=-1, keepdims=True)
            ctx = jnp.dot(p, vh, preferred_element_type=f32)          # (T, DK)
            att_b = att_b + jnp.dot(ctx.astype(bf16), wo_ref[h],
                                    preferred_element_type=f32)       # (T, D)
        x1_ref[r0:r0 + T, :] = x_b + att_b   # residual 1, written per batch slice

    # ---------------- norm2 + position-wise feed forward (whole slab) ----------------
    x1 = x1_ref[...]
    xn2 = _layernorm(x1, n2g_ref[...], n2b_ref[...]).astype(bf16)
    hid = jnp.maximum(
        jnp.dot(xn2, w1_ref[...], preferred_element_type=f32) + b1_ref[...], 0.0)
    ffn = jnp.dot(hid.astype(bf16), w2_ref[...],
                  preferred_element_type=f32) + b2_ref[...]

    # residual 2 — one lane-dense store for the whole block
    out_ref[...] = x1 + ffn


def _batches_per_block():
    """v7x: 1 batch element / grid step so the parallel axis spans both TCs;
    otherwise fold everything into a single grid step (per-step overhead wins)."""
    try:
        kind = jax.devices()[0].device_kind.lower()
    except Exception:
        kind = ""
    if "v7" in kind or "7x" in kind:
        return 1
    return B


def encoder_layer_sanm(x, mask, params, batches_per_block=None):
    """x: (B, T, D) f32; mask: (B, 1, T) binary pad mask.  Returns (y, mask)."""
    bb = batches_per_block if batches_per_block is not None else _batches_per_block()
    assert B % bb == 0
    nb = B // bb

    # Host-side layout plumbing (free / tiny): fold (B,T)->sublanes, precompute masks.
    x2d = x.reshape(B * T, D)
    mcol = jnp.swapaxes(mask, 1, 2).reshape(B * T, 1)   # multiplicative, column form
    amask = (1.0 - mask) * -10000.0                     # additive attention mask

    bf16 = jnp.bfloat16
    wqkv, bqkv = params["wqkv"], params["bqkv"]
    weights = (
        params["n1g"], params["n1b"],
        wqkv[:, 0:D].astype(bf16), wqkv[:, D:2 * D].astype(bf16),
        wqkv[:, 2 * D:3 * D].astype(bf16),
        bqkv[:, 0:D], bqkv[:, D:2 * D], bqkv[:, 2 * D:3 * D],
        params["fsmn"],
        params["wo"].reshape(H, DK, D).astype(bf16), params["bo"],
        params["n2g"], params["n2b"],
        params["w1"].astype(bf16), params["b1"],
        params["w2"].astype(bf16), params["b2"],
    )
    w_specs = [pl.BlockSpec(w.shape, lambda i, _nd=w.ndim: (0,) * _nd)
               for w in weights]

    out2d = pl.pallas_call(
        functools.partial(_encoder_kernel, bb),
        out_shape=jax.ShapeDtypeStruct((B * T, D), jnp.float32),
        grid=(nb,),
        in_specs=[pl.BlockSpec((bb * T, D), lambda i: (i, 0)),
                  pl.BlockSpec((bb * T, 1), lambda i: (i, 0)),
                  pl.BlockSpec((bb, 1, T), lambda i: (i, 0, 0))] + w_specs,
        out_specs=pl.BlockSpec((bb * T, D), lambda i: (i, 0)),
        scratch_shapes=[pltpu.VMEM((FSMN_ROWS, D), jnp.float32),
                        pltpu.VMEM((bb * T, D), jnp.float32)],
        compiler_params=pltpu.CompilerParams(dimension_semantics=("parallel",)),
    )(x2d, mcol, amask, *weights)
    return out2d.reshape(B, T, D), mask


def ref_forward(x, mask, p, mxu_dtype=jnp.bfloat16):
    """Pure-JAX reference mirroring the PyTorch EncoderLayerSANM forward.
    mxu_dtype=bfloat16 mirrors the kernel's MXU-operand casts; float32 = exact."""
    c = lambda a: a.astype(mxu_dtype)
    mm = lambda a, b: jnp.matmul(c(a), c(b), preferred_element_type=jnp.float32)

    amask = (1.0 - mask) * -10000.0
    mask_col = jnp.swapaxes(mask, 1, 2)

    residual = x
    xn = _layernorm(x, p["n1g"], p["n1b"])
    qkv = mm(xn, p["wqkv"]) + p["bqkv"]
    q, k, v = qkv[..., :D], qkv[..., D:2 * D], qkv[..., 2 * D:]

    v_m = v * mask_col
    v_pad = jnp.pad(v_m, ((0, 0), (PAD_L, PAD_R), (0, 0)))
    conv = sum(v_pad[:, kk:kk + T, :] * p["fsmn"][kk][None, None, :] for kk in range(K))
    fsmn_mem = (conv + v_m) * mask_col

    scale = float(DK) ** -0.5
    qh = (q * scale).reshape(B, T, H, DK).transpose(0, 2, 1, 3)
    kh = k.reshape(B, T, H, DK).transpose(0, 2, 1, 3)
    vh = v.reshape(B, T, H, DK).transpose(0, 2, 1, 3)
    scores = jnp.einsum("bhqd,bhkd->bhqk", qh, kh,
                        preferred_element_type=jnp.float32) + amask[:, None, :, :]
    attn = jax.nn.softmax(scores, axis=-1)
    ctx = jnp.einsum("bhqk,bhkd->bhqd", attn, vh,
                     preferred_element_type=jnp.float32)
    ctx = ctx.transpose(0, 2, 1, 3).reshape(B, T, D)
    att = mm(ctx, p["wo"]) + p["bo"] + fsmn_mem
    x1 = residual + att

    xn2 = _layernorm(x1, p["n2g"], p["n2b"])
    hid = jnp.maximum(mm(xn2, p["w1"]) + p["b1"], 0.0)
    ffn = mm(hid, p["w2"]) + p["b2"]
    return x1 + ffn, mask


if __name__ == "__main__":
    key = jax.random.PRNGKey(0)
    ks = jax.random.split(key, 14)

    # Linear weights stored (in, out) (already transposed vs torch); the depthwise
    # Conv1d weight (D,1,K) is stored (K, D).
    params = {
        "n1g": 1.0 + 0.05 * jax.random.normal(ks[0], (1, D), jnp.float32),
        "n1b": 0.05 * jax.random.normal(ks[1], (1, D), jnp.float32),
        "wqkv": 0.1 * jax.random.normal(ks[2], (D, 3 * D), jnp.float32),
        "bqkv": 0.01 * jax.random.normal(ks[3], (1, 3 * D), jnp.float32),
        "fsmn": 0.1 * jax.random.normal(ks[4], (K, D), jnp.float32),
        "wo": 0.1 * jax.random.normal(ks[5], (D, D), jnp.float32),
        "bo": 0.01 * jax.random.normal(ks[6], (1, D), jnp.float32),
        "n2g": 1.0 + 0.05 * jax.random.normal(ks[7], (1, D), jnp.float32),
        "n2b": 0.05 * jax.random.normal(ks[8], (1, D), jnp.float32),
        "w1": 0.1 * jax.random.normal(ks[9], (D, DFF), jnp.float32),
        "b1": 0.01 * jax.random.normal(ks[10], (1, DFF), jnp.float32),
        "w2": 0.1 * jax.random.normal(ks[11], (DFF, D), jnp.float32),
        "b2": 0.01 * jax.random.normal(ks[12], (1, D), jnp.float32),
    }

    x = jax.random.normal(ks[13], (B, T, D), jnp.float32)
    lengths = jnp.array([T, T - 5], dtype=jnp.int32)
    pad = (jnp.arange(T)[None, :] < lengths[:, None]).astype(jnp.float32)  # (B, T)
    mask = pad[:, None, :]                                                 # (B, 1, T)

    out, mask_out = encoder_layer_sanm(x, mask, params)
    out = jax.block_until_ready(out)
    assert out.shape == (B, T, D)

    ref_bf, _ = ref_forward(x, mask, params, mxu_dtype=jnp.bfloat16)   # matches kernel math
    ref_f32, _ = ref_forward(x, mask, params, mxu_dtype=jnp.float32)   # exact semantics
    err_bf = float(jnp.max(jnp.abs(out - ref_bf)))
    err_f32 = float(jnp.max(jnp.abs(out - ref_f32)))
    assert jnp.allclose(out, ref_bf, rtol=2e-3, atol=2e-3), err_bf
    assert jnp.allclose(out, ref_f32, rtol=5e-2, atol=5e-2), err_f32

    print("KERNEL_OK")
</pallas_src>

<mosaic_0001>
module attributes {stable_mosaic.version = 11 : i64} {
  func.func @_encoder_kernel(%arg0: i32, %arg1: memref<32x32xf32, #tpu.memory_space<vmem>>, %arg2: memref<32x1xf32, #tpu.memory_space<vmem>>, %arg3: memref<2x1x16xf32, #tpu.memory_space<vmem>>, %arg4: memref<1x32xf32, #tpu.memory_space<vmem>>, %arg5: memref<1x32xf32, #tpu.memory_space<vmem>>, %arg6: memref<32x32xbf16, #tpu.memory_space<vmem>>, %arg7: memref<32x32xbf16, #tpu.memory_space<vmem>>, %arg8: memref<32x32xbf16, #tpu.memory_space<vmem>>, %arg9: memref<1x32xf32, #tpu.memory_space<vmem>>, %arg10: memref<1x32xf32, #tpu.memory_space<vmem>>, %arg11: memref<1x32xf32, #tpu.memory_space<vmem>>, %arg12: memref<11x32xf32, #tpu.memory_space<vmem>>, %arg13: memref<4x8x32xbf16, #tpu.memory_space<vmem>>, %arg14: memref<1x32xf32, #tpu.memory_space<vmem>>, %arg15: memref<1x32xf32, #tpu.memory_space<vmem>>, %arg16: memref<1x32xf32, #tpu.memory_space<vmem>>, %arg17: memref<32x64xbf16, #tpu.memory_space<vmem>>, %arg18: memref<1x64xf32, #tpu.memory_space<vmem>>, %arg19: memref<64x32xbf16, #tpu.memory_space<vmem>>, %arg20: memref<1x32xf32, #tpu.memory_space<vmem>>, %arg21: memref<32x32xf32, #tpu.memory_space<vmem>>, %arg22: memref<32x32xf32, #tpu.memory_space<vmem>>, %arg23: memref<32x32xf32, #tpu.memory_space<vmem>>) attributes {dimension_semantics = [#tpu.dimension_semantics<parallel>], iteration_bounds = array<i64: 1>, scalar_prefetch = 0 : i64, scratch_operands = 2 : i64, tpu.core_type = #tpu.core_type<tc>, window_params = [{transform_indices = @transform_0, window_bounds = array<i64: 32, 32>}, {transform_indices = @transform_1, window_bounds = array<i64: 32, 1>}, {transform_indices = @transform_2, window_bounds = array<i64: 2, 1, 16>}, {pipeline_mode = #tpu.pipeline_mode<synchronous>, transform_indices = @transform_3, window_bounds = array<i64: 1, 32>}, {pipeline_mode = #tpu.pipeline_mode<synchronous>, transform_indices = @transform_4, window_bounds = array<i64: 1, 32>}, {pipeline_mode = #tpu.pipeline_mode<synchronous>, transform_indices = @transform_5, window_bounds = array<i64: 32, 32>}, {pipeline_mode = #tpu.pipeline_mode<synchronous>, transform_indices = @transform_6, window_bounds = array<i64: 32, 32>}, {pipeline_mode = #tpu.pipeline_mode<synchronous>, transform_indices = @transform_7, window_bounds = array<i64: 32, 32>}, {pipeline_mode = #tpu.pipeline_mode<synchronous>, transform_indices = @transform_8, window_bounds = array<i64: 1, 32>}, {pipeline_mode = #tpu.pipeline_mode<synchronous>, transform_indices = @transform_9, window_bounds = array<i64: 1, 32>}, {pipeline_mode = #tpu.pipeline_mode<synchronous>, transform_indices = @transform_10, window_bounds = array<i64: 1, 32>}, {pipeline_mode = #tpu.pipeline_mode<synchronous>, transform_indices = @transform_11, window_bounds = array<i64: 11, 32>}, {pipeline_mode = #tpu.pipeline_mode<synchronous>, transform_indices = @transform_12, window_bounds = array<i64: 4, 8, 32>}, {pipeline_mode = #tpu.pipeline_mode<synchronous>, transform_indices = @transform_13, window_bounds = array<i64: 1, 32>}, {pipeline_mode = #tpu.pipeline_mode<synchronous>, transform_indices = @transform_14, window_bounds = array<i64: 1, 32>}, {pipeline_mode = #tpu.pipeline_mode<synchronous>, transform_indices = @transform_15, window_bounds = array<i64: 1, 32>}, {pipeline_mode = #tpu.pipeline_mode<synchronous>, transform_indices = @transform_16, window_bounds = array<i64: 32, 64>}, {pipeline_mode = #tpu.pipeline_mode<synchronous>, transform_indices = @transform_17, window_bounds = array<i64: 1, 64>}, {pipeline_mode = #tpu.pipeline_mode<synchronous>, transform_indices = @transform_18, window_bounds = array<i64: 64, 32>}, {pipeline_mode = #tpu.pipeline_mode<synchronous>, transform_indices = @transform_19, window_bounds = array<i64: 1, 32>}, {transform_indices = @transform_20, window_bounds = array<i64: 32, 32>}]} {
    %c0 = arith.constant 0 : index
    %c0_0 = arith.constant 0 : index
    %0 = vector.load %arg1[%c0, %c0_0] : memref<32x32xf32, #tpu.memory_space<vmem>>, vector<32x32xf32>
    %c0_1 = arith.constant 0 : index
    %c0_2 = arith.constant 0 : index
    %1 = vector.load %arg2[%c0_1, %c0_2] : memref<32x1xf32, #tpu.memory_space<vmem>>, vector<32x1xf32>
    %c0_3 = arith.constant 0 : index
    %c0_4 = arith.constant 0 : index
    %2 = vector.load %arg4[%c0_3, %c0_4] : memref<1x32xf32, #tpu.memory_space<vmem>>, vector<1x32xf32>
    %c0_5 = arith.constant 0 : index
    %c0_6 = arith.constant 0 : index
    %3 = vector.load %arg5[%c0_5, %c0_6] : memref<1x32xf32, #tpu.memory_space<vmem>>, vector<1x32xf32>
    %cst = arith.constant dense<0.000000e+00> : vector<32xf32>
    %4 = vector.multi_reduction <add>, %0, %cst [1] : vector<32x32xf32> to vector<32xf32>
    %5 = vector.shape_cast %4 : vector<32xf32> to vector<32x1xf32>
    %cst_7 = arith.constant 3.200000e+01 : f32
    %6 = vector.broadcast %cst_7 : f32 to vector<32x1xf32>
    %7 = arith.divf %5, %6 : vector<32x1xf32>
    %8 = vector.broadcast %7 : vector<32x1xf32> to vector<32x32xf32>
    %9 = arith.subf %0, %8 : vector<32x32xf32>
    %10 = arith.mulf %9, %9 : vector<32x32xf32>
    %cst_8 = arith.constant dense<0.000000e+00> : vector<32xf32>
    %11 = vector.multi_reduction <add>, %10, %cst_8 [1] : vector<32x32xf32> to vector<32xf32>
    %12 = vector.shape_cast %11 : vector<32xf32> to vector<32x1xf32>
    %cst_9 = arith.constant 3.200000e+01 : f32
    %13 = vector.broadcast %cst_9 : f32 to vector<32x1xf32>
    %14 = arith.divf %12, %13 : vector<32x1xf32>
    %15 = vector.broadcast %7 : vector<32x1xf32> to vector<32x32xf32>
    %16 = arith.subf %0, %15 : vector<32x32xf32>
    %cst_10 = arith.constant 9.99999974E-6 : f32
    %17 = vector.broadcast %cst_10 : f32 to vector<32x1xf32>
    %18 = arith.addf %14, %17 : vector<32x1xf32>
    %19 = math.rsqrt %18 : vector<32x1xf32>
    %20 = vector.broadcast %19 : vector<32x1xf32> to vector<32x32xf32>
    %21 = arith.mulf %16, %20 : vector<32x32xf32>
    %22 = vector.broadcast %2 : vector<1x32xf32> to vector<32x32xf32>
    %23 = arith.mulf %21, %22 : vector<32x32xf32>
    %24 = vector.broadcast %3 : vector<1x32xf32> to vector<32x32xf32>
    %25 = arith.addf %23, %24 : vector<32x32xf32>
    %26 = arith.truncf %25 : vector<32x32xf32> to vector<32x32xbf16>
    %c0_11 = arith.constant 0 : index
    %c0_12 = arith.constant 0 : index
    %27 = vector.load %arg6[%c0_11, %c0_12] : memref<32x32xbf16, #tpu.memory_space<vmem>>, vector<32x32xbf16>
    %cst_13 = arith.constant dense<0.000000e+00> : vector<32x32xf32>
    %28 = tpu.matmul %26, %27, %cst_13 {dimension_numbers = #tpu.dot_dimension_numbers<[1], [0], [0], [1], [0, 0, 1, 1], [], []>} : vector<32x32xbf16>, vector<32x32xbf16>, vector<32x32xf32> -> vector<32x32xf32>
    %c0_14 = arith.constant 0 : index
    %c0_15 = arith.constant 0 : index
    %29 = vector.load %arg9[%c0_14, %c0_15] : memref<1x32xf32, #tpu.memory_space<vmem>>, vector<1x32xf32>
    %30 = vector.broadcast %29 : vector<1x32xf32> to vector<32x32xf32>
    %31 = arith.addf %28, %30 : vector<32x32xf32>
    %cst_16 = arith.constant 0.353553385 : f32
    %32 = vector.broadcast %cst_16 : f32 to vector<32x32xf32>
    %33 = arith.mulf %31, %32 : vector<32x32xf32>
    %c0_17 = arith.constant 0 : index
    %c0_18 = arith.constant 0 : index
    %34 = vector.load %arg7[%c0_17, %c0_18] : memref<32x32xbf16, #tpu.memory_space<vmem>>, vector<32x32xbf16>
    %cst_19 = arith.constant dense<0.000000e+00> : vector<32x32xf32>
    %35 = tpu.matmul %26, %34, %cst_19 {dimension_numbers = #tpu.dot_dimension_numbers<[1], [0], [0], [1], [0, 0, 1, 1], [], []>} : vector<32x32xbf16>, vector<32x32xbf16>, vector<32x32xf32> -> vector<32x32xf32>
    %c0_20 = arith.constant 0 : index
    %c0_21 = arith.constant 0 : index
    %36 = vector.load %arg10[%c0_20, %c0_21] : memref<1x32xf32, #tpu.memory_space<vmem>>, vector<1x32xf32>
    %37 = vector.broadcast %36 : vector<1x32xf32> to vector<32x32xf32>
    %38 = arith.addf %35, %37 : vector<32x32xf32>
    %c0_22 = arith.constant 0 : index
    %c0_23 = arith.constant 0 : index
    %39 = vector.load %arg8[%c0_22, %c0_23] : memref<32x32xbf16, #tpu.memory_space<vmem>>, vector<32x32xbf16>
    %cst_24 = arith.constant dense<0.000000e+00> : vector<32x32xf32>
    %40 = tpu.matmul %26, %39, %cst_24 {dimension_numbers = #tpu.dot_dimension_numbers<[1], [0], [0], [1], [0, 0, 1, 1], [], []>} : vector<32x32xbf16>, vector<32x32xbf16>, vector<32x32xf32> -> vector<32x32xf32>
    %c0_25 = arith.constant 0 : index
    %c0_26 = arith.constant 0 : index
    %41 = vector.load %arg11[%c0_25, %c0_26] : memref<1x32xf32, #tpu.memory_space<vmem>>, vector<1x32xf32>
    %42 = vector.broadcast %41 : vector<1x32xf32> to vector<32x32xf32>
    %43 = arith.addf %40, %42 : vector<32x32xf32>
    %44 = vector.broadcast %1 : vector<32x1xf32> to vector<32x32xf32>
    %45 = arith.mulf %43, %44 : vector<32x32xf32>
    %cst_27 = arith.constant 0.000000e+00 : f32
    %46 = vector.broadcast %cst_27 : f32 to vector<32x32xf32>
    %c0_28 = arith.constant 0 : index
    %c0_29 = arith.constant 0 : index
    %47 = vector.load %arg22[%c0_28, %c0_29] : memref<32x32xf32, #tpu.memory_space<vmem>>, vector<32x32xf32>
    tpu.vector_store %arg22[%c0_28, %c0_29], %46 {strides = array<i32>} : memref<32x32xf32, #tpu.memory_space<vmem>>, vector<32x32xf32>,
    %48 = vector.extract_strided_slice %0 {offsets = [0, 0], sizes = [16, 32], strides = [1, 1]} : vector<32x32xf32> to vector<16x32xf32>
    %49 = vector.extract_strided_slice %1 {offsets = [0, 0], sizes = [16, 1], strides = [1, 1]} : vector<32x1xf32> to vector<16x1xf32>
    %50 = vector.extract_strided_slice %45 {offsets = [0, 0], sizes = [16, 32], strides = [1, 1]} : vector<32x32xf32> to vector<16x32xf32>
    %c0_30 = arith.constant 0 : index
    %c0_31 = arith.constant 0 : index
    %c0_32 = arith.constant 0 : index
    %51 = vector.load %arg3[%c0_30, %c0_31, %c0_32] : memref<2x1x16xf32, #tpu.memory_space<vmem>>, vector<1x1x16xf32>
    %52 = vector.shape_cast %51 : vector<1x1x16xf32> to vector<1x16xf32>
    %c8 = arith.constant 8 : index
    %c0_33 = arith.constant 0 : index
    %53 = vector.load %arg22[%c8, %c0_33] : memref<32x32xf32, #tpu.memory_space<vmem>>, vector<16x32xf32>
    tpu.vector_store %arg22[%c8, %c0_33], %50 {strides = array<i32>} : memref<32x32xf32, #tpu.memory_space<vmem>>, vector<16x32xf32>,
    %c3 = arith.constant 3 : index
    %c0_34 = arith.constant 0 : index
    %54 = vector.load %arg22[%c3, %c0_34] : memref<32x32xf32, #tpu.memory_space<vmem>>, vector<16x32xf32>
    %c0_35 = arith.constant 0 : index
    %c0_36 = arith.constant 0 : index
    %55 = vector.load %arg12[%c0_35, %c0_36] : memref<11x32xf32, #tpu.memory_space<vmem>>, vector<1x32xf32>
    %56 = vector.broadcast %55 : vector<1x32xf32> to vector<16x32xf32>
    %57 = arith.mulf %54, %56 : vector<16x32xf32>
    %58 = arith.addf %50, %57 : vector<16x32xf32>
    %c4 = arith.constant 4 : index
    %c0_37 = arith.constant 0 : index
    %59 = vector.load %arg22[%c4, %c0_37] : memref<32x32xf32, #tpu.memory_space<vmem>>, vector<16x32xf32>
    %c1 = arith.constant 1 : index
    %c0_38 = arith.constant 0 : index
    %60 = vector.load %arg12[%c1, %c0_38] : memref<11x32xf32, #tpu.memory_space<vmem>>, vector<1x32xf32>
    %61 = vector.broadcast %60 : vector<1x32xf32> to vector<16x32xf32>
    %62 = arith.mulf %59, %61 : vector<16x32xf32>
    %63 = arith.addf %58, %62 : vector<16x32xf32>
    %c5 = arith.constant 5 : index
    %c0_39 = arith.constant 0 : index
    %64 = vector.load %arg22[%c5, %c0_39] : memref<32x32xf32, #tpu.memory_space<vmem>>, vector<16x32xf32>
    %c2 = arith.constant 2 : index
    %c0_40 = arith.constant 0 : index
    %65 = vector.load %arg12[%c2, %c0_40] : memref<11x32xf32, #tpu.memory_space<vmem>>, vector<1x32xf32>
    %66 = vector.broadcast %65 : vector<1x32xf32> to vector<16x32xf32>
    %67 = arith.mulf %64, %66 : vector<16x32xf32>
    %68 = arith.addf %63, %67 : vector<16x32xf32>
    %c6 = arith.constant 6 : index
    %c0_41 = arith.constant 0 : index
    %69 = vector.load %arg22[%c6, %c0_41] : memref<32x32xf32, #tpu.memory_space<vmem>>, vector<16x32xf32>
    %c3_42 = arith.constant 3 : index
    %c0_43 = arith.constant 0 : index
    %70 = vector.load %arg12[%c3_42, %c0_43] : memref<11x32xf32, #tpu.memory_space<vmem>>, vector<1x32xf32>
    %71 = vector.broadcast %70 : vector<1x32xf32> to vector<16x32xf32>
    %72 = arith.mulf %69, %71 : vector<16x32xf32>
    %73 = arith.addf %68, %72 : vector<16x32xf32>
    %c7 = arith.constant 7 : index
    %c0_44 = arith.constant 0 : index
    %74 = vector.load %arg22[%c7, %c0_44] : memref<32x32xf32, #tpu.memory_space<vmem>>, vector<16x32xf32>
    %c4_45 = arith.constant 4 : index
    %c0_46 = arith.constant 0 : index
    %75 = vector.load %arg12[%c4_45, %c0_46] : memref<11x32xf32, #tpu.memory_space<vmem>>, vector<1x32xf32>
    %76 = vector.broadcast %75 : vector<1x32xf32> to vector<16x32xf32>
    %77 = arith.mulf %74, %76 : vector<16x32xf32>
    %78 = arith.addf %73, %77 : vector<16x32xf32>
    %c8_47 = arith.constant 8 : index
    %c0_48 = arith.constant 0 : index
    %79 = vector.load %arg22[%c8_47, %c0_48] : memref<32x32xf32, #tpu.memory_space<vmem>>, vector<16x32xf32>
    %c5_49 = arith.constant 5 : index
    %c0_50 = arith.constant 0 : index
    %80 = vector.load %arg12[%c5_49, %c0_50] : memref<11x32xf32, #tpu.memory_space<vmem>>, vector<1x32xf32>
    %81 = vector.broadcast %80 : vector<1x32xf32> to vector<16x32xf32>
    %82 = arith.mulf %79, %81 : vector<16x32xf32>
    %83 = arith.addf %78, %82 : vector<16x32xf32>
    %c9 = arith.constant 9 : index
    %c0_51 = arith.constant 0 : index
    %84 = vector.load %arg22[%c9, %c0_51] : memref<32x32xf32, #tpu.memory_space<vmem>>, vector<16x32xf32>
    %c6_52 = arith.constant 6 : index
    %c0_53 = arith.constant 0 : index
    %85 = vector.load %arg12[%c6_52, %c0_53] : memref<11x32xf32, #tpu.memory_space<vmem>>, vector<1x32xf32>
    %86 = vector.broadcast %85 : vector<1x32xf32> to vector<16x32xf32>
    %87 = arith.mulf %84, %86 : vector<16x32xf32>
    %88 = arith.addf %83, %87 : vector<16x32xf32>
    %c10 = arith.constant 10 : index
    %c0_54 = arith.constant 0 : index
    %89 = vector.load %arg22[%c10, %c0_54] : memref<32x32xf32, #tpu.memory_space<vmem>>, vector<16x32xf32>
    %c7_55 = arith.constant 7 : index
    %c0_56 = arith.constant 0 : index
    %90 = vector.load %arg12[%c7_55, %c0_56] : memref<11x32xf32, #tpu.memory_space<vmem>>, vector<1x32xf32>
    %91 = vector.broadcast %90 : vector<1x32xf32> to vector<16x32xf32>
    %92 = arith.mulf %89, %91 : vector<16x32xf32>
    %93 = arith.addf %88, %92 : vector<16x32xf32>
    %c11 = arith.constant 11 : index
    %c0_57 = arith.constant 0 : index
    %94 = vector.load %arg22[%c11, %c0_57] : memref<32x32xf32, #tpu.memory_space<vmem>>, vector<16x32xf32>
    %c8_58 = arith.constant 8 : index
    %c0_59 = arith.constant 0 : index
    %95 = vector.load %arg12[%c8_58, %c0_59] : memref<11x32xf32, #tpu.memory_space<vmem>>, vector<1x32xf32>
    %96 = vector.broadcast %95 : vector<1x32xf32> to vector<16x32xf32>
    %97 = arith.mulf %94, %96 : vector<16x32xf32>
    %98 = arith.addf %93, %97 : vector<16x32xf32>
    %c12 = arith.constant 12 : index
    %c0_60 = arith.constant 0 : index
    %99 = vector.load %arg22[%c12, %c0_60] : memref<32x32xf32, #tpu.memory_space<vmem>>, vector<16x32xf32>
    %c9_61 = arith.constant 9 : index
    %c0_62 = arith.constant 0 : index
    %100 = vector.load %arg12[%c9_61, %c0_62] : memref<11x32xf32, #tpu.memory_space<vmem>>, vector<1x32xf32>
    %101 = vector.broadcast %100 : vector<1x32xf32> to vector<16x32xf32>
    %102 = arith.mulf %99, %101 : vector<16x32xf32>
    %103 = arith.addf %98, %102 : vector<16x32xf32>
    %c13 = arith.constant 13 : index
    %c0_63 = arith.constant 0 : index
    %104 = vector.load %arg22[%c13, %c0_63] : memref<32x32xf32, #tpu.memory_space<vmem>>, vector<16x32xf32>
    %c10_64 = arith.constant 10 : index
    %c0_65 = arith.constant 0 : index
    %105 = vector.load %arg12[%c10_64, %c0_65] : memref<11x32xf32, #tpu.memory_space<vmem>>, vector<1x32xf32>
    %106 = vector.broadcast %105 : vector<1x32xf32> to vector<16x32xf32>
    %107 = arith.mulf %104, %106 : vector<16x32xf32>
    %108 = arith.addf %103, %107 : vector<16x32xf32>
    %109 = vector.broadcast %49 : vector<16x1xf32> to vector<16x32xf32>
    %110 = arith.mulf %108, %109 : vector<16x32xf32>
    %c0_66 = arith.constant 0 : index
    %c0_67 = arith.constant 0 : index
    %111 = vector.load %arg14[%c0_66, %c0_67] : memref<1x32xf32, #tpu.memory_space<vmem>>, vector<1x32xf32>
    %112 = vector.broadcast %111 : vector<1x32xf32> to vector<16x32xf32>
    %113 = arith.addf %110, %112 : vector<16x32xf32>
    %114 = vector.extract_strided_slice %33 {offsets = [0, 0], sizes = [16, 8], strides = [1, 1]} : vector<32x32xf32> to vector<16x8xf32>
    %115 = vector.extract_strided_slice %38 {offsets = [0, 0], sizes = [16, 8], strides = [1, 1]} : vector<32x32xf32> to vector<16x8xf32>
    %116 = vector.extract_strided_slice %43 {offsets = [0, 0], sizes = [16, 8], strides = [1, 1]} : vector<32x32xf32> to vector<16x8xf32>
    %cst_68 = arith.constant dense<0.000000e+00> : vector<16x16xf32>
    %117 = tpu.matmul %114, %115, %cst_68 {dimension_numbers = #tpu.dot_dimension_numbers<[1], [1], [0], [0], [0, 0, 1, 0], [], []>} : vector<16x8xf32>, vector<16x8xf32>, vector<16x16xf32> -> vector<16x16xf32>
    %118 = vector.broadcast %52 : vector<1x16xf32> to vector<16x16xf32>
    %119 = arith.addf %117, %118 : vector<16x16xf32>
    %cst_69 = arith.constant dense<0xFF800000> : vector<16xf32>
    %120 = vector.multi_reduction <maximumf>, %119, %cst_69 [1] : vector<16x16xf32> to vector<16xf32>
    %121 = vector.shape_cast %120 : vector<16xf32> to vector<16x1xf32>
    %122 = vector.broadcast %121 : vector<16x1xf32> to vector<16x16xf32>
    %123 = arith.subf %119, %122 : vector<16x16xf32>
    %124 = math.exp %123 : vector<16x16xf32>
    %cst_70 = arith.constant dense<0.000000e+00> : vector<16xf32>
    %125 = vector.multi_reduction <add>, %124, %cst_70 [1] : vector<16x16xf32> to vector<16xf32>
    %126 = vector.shape_cast %125 : vector<16xf32> to vector<16x1xf32>
    %127 = vector.broadcast %126 : vector<16x1xf32> to vector<16x16xf32>
    %128 = arith.divf %124, %127 : vector<16x16xf32>
    %cst_71 = arith.constant dense<0.000000e+00> : vector<16x8xf32>
    %129 = tpu.matmul %128, %116, %cst_71 {dimension_numbers = #tpu.dot_dimension_numbers<[1], [0], [0], [1], [0, 0, 1, 1], [], []>} : vector<16x16xf32>, vector<16x8xf32>, vector<16x8xf32> -> vector<16x8xf32>
    %130 = arith.truncf %129 : vector<16x8xf32> to vector<16x8xbf16>
    %c0_72 = arith.constant 0 : index
    %c0_73 = arith.constant 0 : index
    %c0_74 = arith.constant 0 : index
    %131 = vector.load %arg13[%c0_72, %c0_73, %c0_74] : memref<4x8x32xbf16, #tpu.memory_space<vmem>>, vector<1x8x32xbf16>
    %132 = vector.shape_cast %131 : vector<1x8x32xbf16> to vector<8x32xbf16>
    %cst_75 = arith.constant dense<0.000000e+00> : vector<16x32xf32>
    %133 = tpu.matmul %130, %132, %cst_75 {dimension_numbers = #tpu.dot_dimension_numbers<[1], [0], [0], [1], [0, 0, 1, 1], [], []>} : vector<16x8xbf16>, vector<8x32xbf16>, vector<16x32xf32> -> vector<16x32xf32>
    %134 = arith.addf %113, %133 : vector<16x32xf32>
    %135 = vector.extract_strided_slice %33 {offsets = [0, 8], sizes = [16, 8], strides = [1, 1]} : vector<32x32xf32> to vector<16x8xf32>
    %136 = vector.extract_strided_slice %38 {offsets = [0, 8], sizes = [16, 8], strides = [1, 1]} : vector<32x32xf32> to vector<16x8xf32>
    %137 = vector.extract_strided_slice %43 {offsets = [0, 8], sizes = [16, 8], strides = [1, 1]} : vector<32x32xf32> to vector<16x8xf32>
    %cst_76 = arith.constant dense<0.000000e+00> : vector<16x16xf32>
    %138 = tpu.matmul %135, %136, %cst_76 {dimension_numbers = #tpu.dot_dimension_numbers<[1], [1], [0], [0], [0, 0, 1, 0], [], []>} : vector<16x8xf32>, vector<16x8xf32>, vector<16x16xf32> -> vector<16x16xf32>
    %139 = vector.broadcast %52 : vector<1x16xf32> to vector<16x16xf32>
    %140 = arith.addf %138, %139 : vector<16x16xf32>
    %cst_77 = arith.constant dense<0xFF800000> : vector<16xf32>
    %141 = vector.multi_reduction <maximumf>, %140, %cst_77 [1] : vector<16x16xf32> to vector<16xf32>
    %142 = vector.shape_cast %141 : vector<16xf32> to vector<16x1xf32>
    %143 = vector.broadcast %142 : vector<16x1xf32> to vector<16x16xf32>
    %144 = arith.subf %140, %143 : vector<16x16xf32>
    %145 = math.exp %144 : vector<16x16xf32>
    %cst_78 = arith.constant dense<0.000000e+00> : vector<16xf32>
    %146 = vector.multi_reduction <add>, %145, %cst_78 [1] : vector<16x16xf32> to vector<16xf32>
    %147 = vector.shape_cast %146 : vector<16xf32> to vector<16x1xf32>
    %148 = vector.broadcast %147 : vector<16x1xf32> to vector<16x16xf32>
    %149 = arith.divf %145, %148 : vector<16x16xf32>
    %cst_79 = arith.constant dense<0.000000e+00> : vector<16x8xf32>
    %150 = tpu.matmul %149, %137, %cst_79 {dimension_numbers = #tpu.dot_dimension_numbers<[1], [0], [0], [1], [0, 0, 1, 1], [], []>} : vector<16x16xf32>, vector<16x8xf32>, vector<16x8xf32> -> vector<16x8xf32>
    %151 = arith.truncf %150 : vector<16x8xf32> to vector<16x8xbf16>
    %c1_80 = arith.constant 1 : index
    %c0_81 = arith.constant 0 : index
    %c0_82 = arith.constant 0 : index
    %152 = vector.load %arg13[%c1_80, %c0_81, %c0_82] : memref<4x8x32xbf16, #tpu.memory_space<vmem>>, vector<1x8x32xbf16>
    %153 = vector.shape_cast %152 : vector<1x8x32xbf16> to vector<8x32xbf16>
    %cst_83 = arith.constant dense<0.000000e+00> : vector<16x32xf32>
    %154 = tpu.matmul %151, %153, %cst_83 {dimension_numbers = #tpu.dot_dimension_numbers<[1], [0], [0], [1], [0, 0, 1, 1], [], []>} : vector<16x8xbf16>, vector<8x32xbf16>, vector<16x32xf32> -> vector<16x32xf32>
    %155 = arith.addf %134, %154 : vector<16x32xf32>
    %156 = vector.extract_strided_slice %33 {offsets = [0, 16], sizes = [16, 8], strides = [1, 1]} : vector<32x32xf32> to vector<16x8xf32>
    %157 = vector.extract_strided_slice %38 {offsets = [0, 16], sizes = [16, 8], strides = [1, 1]} : vector<32x32xf32> to vector<16x8xf32>
    %158 = vector.extract_strided_slice %43 {offsets = [0, 16], sizes = [16, 8], strides = [1, 1]} : vector<32x32xf32> to vector<16x8xf32>
    %cst_84 = arith.constant dense<0.000000e+00> : vector<16x16xf32>
    %159 = tpu.matmul %156, %157, %cst_84 {dimension_numbers = #tpu.dot_dimension_numbers<[1], [1], [0], [0], [0, 0, 1, 0], [], []>} : vector<16x8xf32>, vector<16x8xf32>, vector<16x16xf32> -> vector<16x16xf32>
    %160 = vector.broadcast %52 : vector<1x16xf32> to vector<16x16xf32>
    %161 = arith.addf %159, %160 : vector<16x16xf32>
    %cst_85 = arith.constant dense<0xFF800000> : vector<16xf32>
    %162 = vector.multi_reduction <maximumf>, %161, %cst_85 [1] : vector<16x16xf32> to vector<16xf32>
    %163 = vector.shape_cast %162 : vector<16xf32> to vector<16x1xf32>
    %164 = vector.broadcast %163 : vector<16x1xf32> to vector<16x16xf32>
    %165 = arith.subf %161, %164 : vector<16x16xf32>
    %166 = math.exp %165 : vector<16x16xf32>
    %cst_86 = arith.constant dense<0.000000e+00> : vector<16xf32>
    %167 = vector.multi_reduction <add>, %166, %cst_86 [1] : vector<16x16xf32> to vector<16xf32>
    %168 = vector.shape_cast %167 : vector<16xf32> to vector<16x1xf32>
    %169 = vector.broadcast %168 : vector<16x1xf32> to vector<16x16xf32>
    %170 = arith.divf %166, %169 : vector<16x16xf32>
    %cst_87 = arith.constant dense<0.000000e+00> : vector<16x8xf32>
    %171 = tpu.matmul %170, %158, %cst_87 {dimension_numbers = #tpu.dot_dimension_numbers<[1], [0], [0], [1], [0, 0, 1, 1], [], []>} : vector<16x16xf32>, vector<16x8xf32>, vector<16x8xf32> -> vector<16x8xf32>
    %172 = arith.truncf %171 : vector<16x8xf32> to vector<16x8xbf16>
    %c2_88 = arith.constant 2 : index
    %c0_89 = arith.constant 0 : index
    %c0_90 = arith.constant 0 : index
    %173 = vector.load %arg13[%c2_88, %c0_89, %c0_90] : memref<4x8x32xbf16, #tpu.memory_space<vmem>>, vector<1x8x32xbf16>
    %174 = vector.shape_cast %173 : vector<1x8x32xbf16> to vector<8x32xbf16>
    %cst_91 = arith.constant dense<0.000000e+00> : vector<16x32xf32>
    %175 = tpu.matmul %172, %174, %cst_91 {dimension_numbers = #tpu.dot_dimension_numbers<[1], [0], [0], [1], [0, 0, 1, 1], [], []>} : vector<16x8xbf16>, vector<8x32xbf16>, vector<16x32xf32> -> vector<16x32xf32>
    %176 = arith.addf %155, %175 : vector<16x32xf32>
    %177 = vector.extract_strided_slice %33 {offsets = [0, 24], sizes = [16, 8], strides = [1, 1]} : vector<32x32xf32> to vector<16x8xf32>
    %178 = vector.extract_strided_slice %38 {offsets = [0, 24], sizes = [16, 8], strides = [1, 1]} : vector<32x32xf32> to vector<16x8xf32>
    %179 = vector.extract_strided_slice %43 {offsets = [0, 24], sizes = [16, 8], strides = [1, 1]} : vector<32x32xf32> to vector<16x8xf32>
    %cst_92 = arith.constant dense<0.000000e+00> : vector<16x16xf32>
    %180 = tpu.matmul %177, %178, %cst_92 {dimension_numbers = #tpu.dot_dimension_numbers<[1], [1], [0], [0], [0, 0, 1, 0], [], []>} : vector<16x8xf32>, vector<16x8xf32>, vector<16x16xf32> -> vector<16x16xf32>
    %181 = vector.broadcast %52 : vector<1x16xf32> to vector<16x16xf32>
    %182 = arith.addf %180, %181 : vector<16x16xf32>
    %cst_93 = arith.constant dense<0xFF800000> : vector<16xf32>
    %183 = vector.multi_reduction <maximumf>, %182, %cst_93 [1] : vector<16x16xf32> to vector<16xf32>
    %184 = vector.shape_cast %183 : vector<16xf32> to vector<16x1xf32>
    %185 = vector.broadcast %184 : vector<16x1xf32> to vector<16x16xf32>
    %186 = arith.subf %182, %185 : vector<16x16xf32>
    %187 = math.exp %186 : vector<16x16xf32>
    %cst_94 = arith.constant dense<0.000000e+00> : vector<16xf32>
    %188 = vector.multi_reduction <add>, %187, %cst_94 [1] : vector<16x16xf32> to vector<16xf32>
    %189 = vector.shape_cast %188 : vector<16xf32> to vector<16x1xf32>
    %190 = vector.broadcast %189 : vector<16x1xf32> to vector<16x16xf32>
    %191 = arith.divf %187, %190 : vector<16x16xf32>
    %cst_95 = arith.constant dense<0.000000e+00> : vector<16x8xf32>
    %192 = tpu.matmul %191, %179, %cst_95 {dimension_numbers = #tpu.dot_dimension_numbers<[1], [0], [0], [1], [0, 0, 1, 1], [], []>} : vector<16x16xf32>, vector<16x8xf32>, vector<16x8xf32> -> vector<16x8xf32>
    %193 = arith.truncf %192 : vector<16x8xf32> to vector<16x8xbf16>
    %c3_96 = arith.constant 3 : index
    %c0_97 = arith.constant 0 : index
    %c0_98 = arith.constant 0 : index
    %194 = vector.load %arg13[%c3_96, %c0_97, %c0_98] : memref<4x8x32xbf16, #tpu.memory_space<vmem>>, vector<1x8x32xbf16>
    %195 = vector.shape_cast %194 : vector<1x8x32xbf16> to vector<8x32xbf16>
    %cst_99 = arith.constant dense<0.000000e+00> : vector<16x32xf32>
    %196 = tpu.matmul %193, %195, %cst_99 {dimension_numbers = #tpu.dot_dimension_numbers<[1], [0], [0], [1], [0, 0, 1, 1], [], []>} : vector<16x8xbf16>, vector<8x32xbf16>, vector<16x32xf32> -> vector<16x32xf32>
    %197 = arith.addf %176, %196 : vector<16x32xf32>
    %198 = arith.addf %48, %197 : vector<16x32xf32>
    %c0_100 = arith.constant 0 : index
    %c0_101 = arith.constant 0 : index
    %199 = vector.load %arg23[%c0_100, %c0_101] : memref<32x32xf32, #tpu.memory_space<vmem>>, vector<16x32xf32>
    tpu.vector_store %arg23[%c0_100, %c0_101], %198 {strides = array<i32>} : memref<32x32xf32, #tpu.memory_space<vmem>>, vector<16x32xf32>,
    %200 = vector.extract_strided_slice %0 {offsets = [16, 0], sizes = [16, 32], strides = [1, 1]} : vector<32x32xf32> to vector<16x32xf32>
    %201 = vector.extract_strided_slice %1 {offsets = [16, 0], sizes = [16, 1], strides = [1, 1]} : vector<32x1xf32> to vector<16x1xf32>
    %202 = vector.extract_strided_slice %45 {offsets = [16, 0], sizes = [16, 32], strides = [1, 1]} : vector<32x32xf32> to vector<16x32xf32>
    %c1_102 = arith.constant 1 : index
    %c0_103 = arith.constant 0 : index
    %c0_104 = arith.constant 0 : index
    %203 = vector.load %arg3[%c1_102, %c0_103, %c0_104] : memref<2x1x16xf32, #tpu.memory_space<vmem>>, vector<1x1x16xf32>
    %204 = vector.shape_cast %203 : vector<1x1x16xf32> to vector<1x16xf32>
    %c8_105 = arith.constant 8 : index
    %c0_106 = arith.constant 0 : index
    %205 = vector.load %arg22[%c8_105, %c0_106] : memref<32x32xf32, #tpu.memory_space<vmem>>, vector<16x32xf32>
    tpu.vector_store %arg22[%c8_105, %c0_106], %202 {strides = array<i32>} : memref<32x32xf32, #tpu.memory_space<vmem>>, vector<16x32xf32>,
    %c3_107 = arith.constant 3 : index
    %c0_108 = arith.constant 0 : index
    %206 = vector.load %arg22[%c3_107, %c0_108] : memref<32x32xf32, #tpu.memory_space<vmem>>, vector<16x32xf32>
    %c0_109 = arith.constant 0 : index
    %c0_110 = arith.constant 0 : index
    %207 = vector.load %arg12[%c0_109, %c0_110] : memref<11x32xf32, #tpu.memory_space<vmem>>, vector<1x32xf32>
    %208 = vector.broadcast %207 : vector<1x32xf32> to vector<16x32xf32>
    %209 = arith.mulf %206, %208 : vector<16x32xf32>
    %210 = arith.addf %202, %209 : vector<16x32xf32>
    %c4_111 = arith.constant 4 : index
    %c0_112 = arith.constant 0 : index
    %211 = vector.load %arg22[%c4_111, %c0_112] : memref<32x32xf32, #tpu.memory_space<vmem>>, vector<16x32xf32>
    %c1_113 = arith.constant 1 : index
    %c0_114 = arith.constant 0 : index
    %212 = vector.load %arg12[%c1_113, %c0_114] : memref<11x32xf32, #tpu.memory_space<vmem>>, vector<1x32xf32>
    %213 = vector.broadcast %212 : vector<1x32xf32> to vector<16x32xf32>
    %214 = arith.mulf %211, %213 : vector<16x32xf32>
    %215 = arith.addf %210, %214 : vector<16x32xf32>
    %c5_115 = arith.constant 5 : index
    %c0_116 = arith.constant 0 : index
    %216 = vector.load %arg22[%c5_115, %c0_116] : memref<32x32xf32, #tpu.memory_space<vmem>>, vector<16x32xf32>
    %c2_117 = arith.constant 2 : index
    %c0_118 = arith.constant 0 : index
    %217 = vector.load %arg12[%c2_117, %c0_118] : memref<11x32xf32, #tpu.memory_space<vmem>>, vector<1x32xf32>
    %218 = vector.broadcast %217 : vector<1x32xf32> to vector<16x32xf32>
    %219 = arith.mulf %216, %218 : vector<16x32xf32>
    %220 = arith.addf %215, %219 : vector<16x32xf32>
    %c6_119 = arith.constant 6 : index
    %c0_120 = arith.constant 0 : index
    %221 = vector.load %arg22[%c6_119, %c0_120] : memref<32x32xf32, #tpu.memory_space<vmem>>, vector<16x32xf32>
    %c3_121 = arith.constant 3 : index
    %c0_122 = arith.constant 0 : index
    %222 = vector.load %arg12[%c3_121, %c0_122] : memref<11x32xf32, #tpu.memory_space<vmem>>, vector<1x32xf32>
    %223 = vector.broadcast %222 : vector<1x32xf32> to vector<16x32xf32>
    %224 = arith.mulf %221, %223 : vector<16x32xf32>
    %225 = arith.addf %220, %224 : vector<16x32xf32>
    %c7_123 = arith.constant 7 : index
    %c0_124 = arith.constant 0 : index
    %226 = vector.load %arg22[%c7_123, %c0_124] : memref<32x32xf32, #tpu.memory_space<vmem>>, vector<16x32xf32>
    %c4_125 = arith.constant 4 : index
    %c0_126 = arith.constant 0 : index
    %227 = vector.load %arg12[%c4_125, %c0_126] : memref<11x32xf32, #tpu.memory_space<vmem>>, vector<1x32xf32>
    %228 = vector.broadcast %227 : vector<1x32xf32> to vector<16x32xf32>
    %229 = arith.mulf %226, %228 : vector<16x32xf32>
    %230 = arith.addf %225, %229 : vector<16x32xf32>
    %c8_127 = arith.constant 8 : index
    %c0_128 = arith.constant 0 : index
    %231 = vector.load %arg22[%c8_127, %c0_128] : memref<32x32xf32, #tpu.memory_space<vmem>>, vector<16x32xf32>
    %c5_129 = arith.constant 5 : index
    %c0_130 = arith.constant 0 : index
    %232 = vector.load %arg12[%c5_129, %c0_130] : memref<11x32xf32, #tpu.memory_space<vmem>>, vector<1x32xf32>
    %233 = vector.broadcast %232 : vector<1x32xf32> to vector<16x32xf32>
    %234 = arith.mulf %231, %233 : vector<16x32xf32>
    %235 = arith.addf %230, %234 : vector<16x32xf32>
    %c9_131 = arith.constant 9 : index
    %c0_132 = arith.constant 0 : index
    %236 = vector.load %arg22[%c9_131, %c0_132] : memref<32x32xf32, #tpu.memory_space<vmem>>, vector<16x32xf32>
    %c6_133 = arith.constant 6 : index
    %c0_134 = arith.constant 0 : index
    %237 = vector.load %arg12[%c6_133, %c0_134] : memref<11x32xf32, #tpu.memory_space<vmem>>, vector<1x32xf32>
    %238 = vector.broadcast %237 : vector<1x32xf32> to vector<16x32xf32>
    %239 = arith.mulf %236, %238 : vector<16x32xf32>
    %240 = arith.addf %235, %239 : vector<16x32xf32>
    %c10_135 = arith.constant 10 : index
    %c0_136 = arith.constant 0 : index
    %241 = vector.load %arg22[%c10_135, %c0_136] : memref<32x32xf32, #tpu.memory_space<vmem>>, vector<16x32xf32>
    %c7_137 = arith.constant 7 : index
    %c0_138 = arith.constant 0 : index
    %242 = vector.load %arg12[%c7_137, %c0_138] : memref<11x32xf32, #tpu.memory_space<vmem>>, vector<1x32xf32>
    %243 = vector.broadcast %242 : vector<1x32xf32> to vector<16x32xf32>
    %244 = arith.mulf %241, %243 : vector<16x32xf32>
    %245 = arith.addf %240, %244 : vector<16x32xf32>
    %c11_139 = arith.constant 11 : index
    %c0_140 = arith.constant 0 : index
    %246 = vector.load %arg22[%c11_139, %c0_140] : memref<32x32xf32, #tpu.memory_space<vmem>>, vector<16x32xf32>
    %c8_141 = arith.constant 8 : index
    %c0_142 = arith.constant 0 : index
    %247 = vector.load %arg12[%c8_141, %c0_142] : memref<11x32xf32, #tpu.memory_space<vmem>>, vector<1x32xf32>
    %248 = vector.broadcast %247 : vector<1x32xf32> to vector<16x32xf32>
    %249 = arith.mulf %246, %248 : vector<16x32xf32>
    %250 = arith.addf %245, %249 : vector<16x32xf32>
    %c12_143 = arith.constant 12 : index
    %c0_144 = arith.constant 0 : index
    %251 = vector.load %arg22[%c12_143, %c0_144] : memref<32x32xf32, #tpu.memory_space<vmem>>, vector<16x32xf32>
    %c9_145 = arith.constant 9 : index
    %c0_146 = arith.constant 0 : index
    %252 = vector.load %arg12[%c9_145, %c0_146] : memref<11x32xf32, #tpu.memory_space<vmem>>, vector<1x32xf32>
    %253 = vector.broadcast %252 : vector<1x32xf32> to vector<16x32xf32>
    %254 = arith.mulf %251, %253 : vector<16x32xf32>
    %255 = arith.addf %250, %254 : vector<16x32xf32>
    %c13_147 = arith.constant 13 : index
    %c0_148 = arith.constant 0 : index
    %256 = vector.load %arg22[%c13_147, %c0_148] : memref<32x32xf32, #tpu.memory_space<vmem>>, vector<16x32xf32>
    %c10_149 = arith.constant 10 : index
    %c0_150 = arith.constant 0 : index
    %257 = vector.load %arg12[%c10_149, %c0_150] : memref<11x32xf32, #tpu.memory_space<vmem>>, vector<1x32xf32>
    %258 = vector.broadcast %257 : vector<1x32xf32> to vector<16x32xf32>
    %259 = arith.mulf %256, %258 : vector<16x32xf32>
    %260 = arith.addf %255, %259 : vector<16x32xf32>
    %261 = vector.broadcast %201 : vector<16x1xf32> to vector<16x32xf32>
    %262 = arith.mulf %260, %261 : vector<16x32xf32>
    %c0_151 = arith.constant 0 : index
    %c0_152 = arith.constant 0 : index
    %263 = vector.load %arg14[%c0_151, %c0_152] : memref<1x32xf32, #tpu.memory_space<vmem>>, vector<1x32xf32>
    %264 = vector.broadcast %263 : vector<1x32xf32> to vector<16x32xf32>
    %265 = arith.addf %262, %264 : vector<16x32xf32>
    %266 = vector.extract_strided_slice %33 {offsets = [16, 0], sizes = [16, 8], strides = [1, 1]} : vector<32x32xf32> to vector<16x8xf32>
    %267 = vector.extract_strided_slice %38 {offsets = [16, 0], sizes = [16, 8], strides = [1, 1]} : vector<32x32xf32> to vector<16x8xf32>
    %268 = vector.extract_strided_slice %43 {offsets = [16, 0], sizes = [16, 8], strides = [1, 1]} : vector<32x32xf32> to vector<16x8xf32>
    %cst_153 = arith.constant dense<0.000000e+00> : vector<16x16xf32>
    %269 = tpu.matmul %266, %267, %cst_153 {dimension_numbers = #tpu.dot_dimension_numbers<[1], [1], [0], [0], [0, 0, 1, 0], [], []>} : vector<16x8xf32>, vector<16x8xf32>, vector<16x16xf32> -> vector<16x16xf32>
    %270 = vector.broadcast %204 : vector<1x16xf32> to vector<16x16xf32>
    %271 = arith.addf %269, %270 : vector<16x16xf32>
    %cst_154 = arith.constant dense<0xFF800000> : vector<16xf32>
    %272 = vector.multi_reduction <maximumf>, %271, %cst_154 [1] : vector<16x16xf32> to vector<16xf32>
    %273 = vector.shape_cast %272 : vector<16xf32> to vector<16x1xf32>
    %274 = vector.broadcast %273 : vector<16x1xf32> to vector<16x16xf32>
    %275 = arith.subf %271, %274 : vector<16x16xf32>
    %276 = math.exp %275 : vector<16x16xf32>
    %cst_155 = arith.constant dense<0.000000e+00> : vector<16xf32>
    %277 = vector.multi_reduction <add>, %276, %cst_155 [1] : vector<16x16xf32> to vector<16xf32>
    %278 = vector.shape_cast %277 : vector<16xf32> to vector<16x1xf32>
    %279 = vector.broadcast %278 : vector<16x1xf32> to vector<16x16xf32>
    %280 = arith.divf %276, %279 : vector<16x16xf32>
    %cst_156 = arith.constant dense<0.000000e+00> : vector<16x8xf32>
    %281 = tpu.matmul %280, %268, %cst_156 {dimension_numbers = #tpu.dot_dimension_numbers<[1], [0], [0], [1], [0, 0, 1, 1], [], []>} : vector<16x16xf32>, vector<16x8xf32>, vector<16x8xf32> -> vector<16x8xf32>
    %282 = arith.truncf %281 : vector<16x8xf32> to vector<16x8xbf16>
    %c0_157 = arith.constant 0 : index
    %c0_158 = arith.constant 0 : index
    %c0_159 = arith.constant 0 : index
    %283 = vector.load %arg13[%c0_157, %c0_158, %c0_159] : memref<4x8x32xbf16, #tpu.memory_space<vmem>>, vector<1x8x32xbf16>
    %284 = vector.shape_cast %283 : vector<1x8x32xbf16> to vector<8x32xbf16>
    %cst_160 = arith.constant dense<0.000000e+00> : vector<16x32xf32>
    %285 = tpu.matmul %282, %284, %cst_160 {dimension_numbers = #tpu.dot_dimension_numbers<[1], [0], [0], [1], [0, 0, 1, 1], [], []>} : vector<16x8xbf16>, vector<8x32xbf16>, vector<16x32xf32> -> vector<16x32xf32>
    %286 = arith.addf %265, %285 : vector<16x32xf32>
    %287 = vector.extract_strided_slice %33 {offsets = [16, 8], sizes = [16, 8], strides = [1, 1]} : vector<32x32xf32> to vector<16x8xf32>
    %288 = vector.extract_strided_slice %38 {offsets = [16, 8], sizes = [16, 8], strides = [1, 1]} : vector<32x32xf32> to vector<16x8xf32>
    %289 = vector.extract_strided_slice %43 {offsets = [16, 8], sizes = [16, 8], strides = [1, 1]} : vector<32x32xf32> to vector<16x8xf32>
    %cst_161 = arith.constant dense<0.000000e+00> : vector<16x16xf32>
    %290 = tpu.matmul %287, %288, %cst_161 {dimension_numbers = #tpu.dot_dimension_numbers<[1], [1], [0], [0], [0, 0, 1, 0], [], []>} : vector<16x8xf32>, vector<16x8xf32>, vector<16x16xf32> -> vector<16x16xf32>
    %291 = vector.broadcast %204 : vector<1x16xf32> to vector<16x16xf32>
    %292 = arith.addf %290, %291 : vector<16x16xf32>
    %cst_162 = arith.constant dense<0xFF800000> : vector<16xf32>
    %293 = vector.multi_reduction <maximumf>, %292, %cst_162 [1] : vector<16x16xf32> to vector<16xf32>
    %294 = vector.shape_cast %293 : vector<16xf32> to vector<16x1xf32>
    %295 = vector.broadcast %294 : vector<16x1xf32> to vector<16x16xf32>
    %296 = arith.subf %292, %295 : vector<16x16xf32>
    %297 = math.exp %296 : vector<16x16xf32>
    %cst_163 = arith.constant dense<0.000000e+00> : vector<16xf32>
    %298 = vector.multi_reduction <add>, %297, %cst_163 [1] : vector<16x16xf32> to vector<16xf32>
    %299 = vector.shape_cast %298 : vector<16xf32> to vector<16x1xf32>
    %300 = vector.broadcast %299 : vector<16x1xf32> to vector<16x16xf32>
    %301 = arith.divf %297, %300 : vector<16x16xf32>
    %cst_164 = arith.constant dense<0.000000e+00> : vector<16x8xf32>
    %302 = tpu.matmul %301, %289, %cst_164 {dimension_numbers = #tpu.dot_dimension_numbers<[1], [0], [0], [1], [0, 0, 1, 1], [], []>} : vector<16x16xf32>, vector<16x8xf32>, vector<16x8xf32> -> vector<16x8xf32>
    %303 = arith.truncf %302 : vector<16x8xf32> to vector<16x8xbf16>
    %c1_165 = arith.constant 1 : index
    %c0_166 = arith.constant 0 : index
    %c0_167 = arith.constant 0 : index
    %304 = vector.load %arg13[%c1_165, %c0_166, %c0_167] : memref<4x8x32xbf16, #tpu.memory_space<vmem>>, vector<1x8x32xbf16>
    %305 = vector.shape_cast %304 : vector<1x8x32xbf16> to vector<8x32xbf16>
    %cst_168 = arith.constant dense<0.000000e+00> : vector<16x32xf32>
    %306 = tpu.matmul %303, %305, %cst_168 {dimension_numbers = #tpu.dot_dimension_numbers<[1], [0], [0], [1], [0, 0, 1, 1], [], []>} : vector<16x8xbf16>, vector<8x32xbf16>, vector<16x32xf32> -> vector<16x32xf32>
    %307 = arith.addf %286, %306 : vector<16x32xf32>
    %308 = vector.extract_strided_slice %33 {offsets = [16, 16], sizes = [16, 8], strides = [1, 1]} : vector<32x32xf32> to vector<16x8xf32>
    %309 = vector.extract_strided_slice %38 {offsets = [16, 16], sizes = [16, 8], strides = [1, 1]} : vector<32x32xf32> to vector<16x8xf32>
    %310 = vector.extract_strided_slice %43 {offsets = [16, 16], sizes = [16, 8], strides = [1, 1]} : vector<32x32xf32> to vector<16x8xf32>
    %cst_169 = arith.constant dense<0.000000e+00> : vector<16x16xf32>
    %311 = tpu.matmul %308, %309, %cst_169 {dimension_numbers = #tpu.dot_dimension_numbers<[1], [1], [0], [0], [0, 0, 1, 0], [], []>} : vector<16x8xf32>, vector<16x8xf32>, vector<16x16xf32> -> vector<16x16xf32>
    %312 = vector.broadcast %204 : vector<1x16xf32> to vector<16x16xf32>
    %313 = arith.addf %311, %312 : vector<16x16xf32>
    %cst_170 = arith.constant dense<0xFF800000> : vector<16xf32>
    %314 = vector.multi_reduction <maximumf>, %313, %cst_170 [1] : vector<16x16xf32> to vector<16xf32>
    %315 = vector.shape_cast %314 : vector<16xf32> to vector<16x1xf32>
    %316 = vector.broadcast %315 : vector<16x1xf32> to vector<16x16xf32>
    %317 = arith.subf %313, %316 : vector<16x16xf32>
    %318 = math.exp %317 : vector<16x16xf32>
    %cst_171 = arith.constant dense<0.000000e+00> : vector<16xf32>
    %319 = vector.multi_reduction <add>, %318, %cst_171 [1] : vector<16x16xf32> to vector<16xf32>
    %320 = vector.shape_cast %319 : vector<16xf32> to vector<16x1xf32>
    %321 = vector.broadcast %320 : vector<16x1xf32> to vector<16x16xf32>
    %322 = arith.divf %318, %321 : vector<16x16xf32>
    %cst_172 = arith.constant dense<0.000000e+00> : vector<16x8xf32>
    %323 = tpu.matmul %322, %310, %cst_172 {dimension_numbers = #tpu.dot_dimension_numbers<[1], [0], [0], [1], [0, 0, 1, 1], [], []>} : vector<16x16xf32>, vector<16x8xf32>, vector<16x8xf32> -> vector<16x8xf32>
    %324 = arith.truncf %323 : vector<16x8xf32> to vector<16x8xbf16>
    %c2_173 = arith.constant 2 : index
    %c0_174 = arith.constant 0 : index
    %c0_175 = arith.constant 0 : index
    %325 = vector.load %arg13[%c2_173, %c0_174, %c0_175] : memref<4x8x32xbf16, #tpu.memory_space<vmem>>, vector<1x8x32xbf16>
    %326 = vector.shape_cast %325 : vector<1x8x32xbf16> to vector<8x32xbf16>
    %cst_176 = arith.constant dense<0.000000e+00> : vector<16x32xf32>
    %327 = tpu.matmul %324, %326, %cst_176 {dimension_numbers = #tpu.dot_dimension_numbers<[1], [0], [0], [1], [0, 0, 1, 1], [], []>} : vector<16x8xbf16>, vector<8x32xbf16>, vector<16x32xf32> -> vector<16x32xf32>
    %328 = arith.addf %307, %327 : vector<16x32xf32>
    %329 = vector.extract_strided_slice %33 {offsets = [16, 24], sizes = [16, 8], strides = [1, 1]} : vector<32x32xf32> to vector<16x8xf32>
    %330 = vector.extract_strided_slice %38 {offsets = [16, 24], sizes = [16, 8], strides = [1, 1]} : vector<32x32xf32> to vector<16x8xf32>
    %331 = vector.extract_strided_slice %43 {offsets = [16, 24], sizes = [16, 8], strides = [1, 1]} : vector<32x32xf32> to vector<16x8xf32>
    %cst_177 = arith.constant dense<0.000000e+00> : vector<16x16xf32>
    %332 = tpu.matmul %329, %330, %cst_177 {dimension_numbers = #tpu.dot_dimension_numbers<[1], [1], [0], [0], [0, 0, 1, 0], [], []>} : vector<16x8xf32>, vector<16x8xf32>, vector<16x16xf32> -> vector<16x16xf32>
    %333 = vector.broadcast %204 : vector<1x16xf32> to vector<16x16xf32>
    %334 = arith.addf %332, %333 : vector<16x16xf32>
    %cst_178 = arith.constant dense<0xFF800000> : vector<16xf32>
    %335 = vector.multi_reduction <maximumf>, %334, %cst_178 [1] : vector<16x16xf32> to vector<16xf32>
    %336 = vector.shape_cast %335 : vector<16xf32> to vector<16x1xf32>
    %337 = vector.broadcast %336 : vector<16x1xf32> to vector<16x16xf32>
    %338 = arith.subf %334, %337 : vector<16x16xf32>
    %339 = math.exp %338 : vector<16x16xf32>
    %cst_179 = arith.constant dense<0.000000e+00> : vector<16xf32>
    %340 = vector.multi_reduction <add>, %339, %cst_179 [1] : vector<16x16xf32> to vector<16xf32>
    %341 = vector.shape_cast %340 : vector<16xf32> to vector<16x1xf32>
    %342 = vector.broadcast %341 : vector<16x1xf32> to vector<16x16xf32>
    %343 = arith.divf %339, %342 : vector<16x16xf32>
    %cst_180 = arith.constant dense<0.000000e+00> : vector<16x8xf32>
    %344 = tpu.matmul %343, %331, %cst_180 {dimension_numbers = #tpu.dot_dimension_numbers<[1], [0], [0], [1], [0, 0, 1, 1], [], []>} : vector<16x16xf32>, vector<16x8xf32>, vector<16x8xf32> -> vector<16x8xf32>
    %345 = arith.truncf %344 : vector<16x8xf32> to vector<16x8xbf16>
    %c3_181 = arith.constant 3 : index
    %c0_182 = arith.constant 0 : index
    %c0_183 = arith.constant 0 : index
    %346 = vector.load %arg13[%c3_181, %c0_182, %c0_183] : memref<4x8x32xbf16, #tpu.memory_space<vmem>>, vector<1x8x32xbf16>
    %347 = vector.shape_cast %346 : vector<1x8x32xbf16> to vector<8x32xbf16>
    %cst_184 = arith.constant dense<0.000000e+00> : vector<16x32xf32>
    %348 = tpu.matmul %345, %347, %cst_184 {dimension_numbers = #tpu.dot_dimension_numbers<[1], [0], [0], [1], [0, 0, 1, 1], [], []>} : vector<16x8xbf16>, vector<8x32xbf16>, vector<16x32xf32> -> vector<16x32xf32>
    %349 = arith.addf %328, %348 : vector<16x32xf32>
    %350 = arith.addf %200, %349 : vector<16x32xf32>
    %c16 = arith.constant 16 : index
    %c0_185 = arith.constant 0 : index
    %351 = vector.load %arg23[%c16, %c0_185] : memref<32x32xf32, #tpu.memory_space<vmem>>, vector<16x32xf32>
    tpu.vector_store %arg23[%c16, %c0_185], %350 {strides = array<i32>} : memref<32x32xf32, #tpu.memory_space<vmem>>, vector<16x32xf32>,
    %c0_186 = arith.constant 0 : index
    %c0_187 = arith.constant 0 : index
    %352 = vector.load %arg23[%c0_186, %c0_187] : memref<32x32xf32, #tpu.memory_space<vmem>>, vector<32x32xf32>
    %c0_188 = arith.constant 0 : index
    %c0_189 = arith.constant 0 : index
    %353 = vector.load %arg15[%c0_188, %c0_189] : memref<1x32xf32, #tpu.memory_space<vmem>>, vector<1x32xf32>
    %c0_190 = arith.constant 0 : index
    %c0_191 = arith.constant 0 : index
    %354 = vector.load %arg16[%c0_190, %c0_191] : memref<1x32xf32, #tpu.memory_space<vmem>>, vector<1x32xf32>
    %cst_192 = arith.constant dense<0.000000e+00> : vector<32xf32>
    %355 = vector.multi_reduction <add>, %352, %cst_192 [1] : vector<32x32xf32> to vector<32xf32>
    %356 = vector.shape_cast %355 : vector<32xf32> to vector<32x1xf32>
    %cst_193 = arith.constant 3.200000e+01 : f32
    %357 = vector.broadcast %cst_193 : f32 to vector<32x1xf32>
    %358 = arith.divf %356, %357 : vector<32x1xf32>
    %359 = vector.broadcast %358 : vector<32x1xf32> to vector<32x32xf32>
    %360 = arith.subf %352, %359 : vector<32x32xf32>
    %361 = arith.mulf %360, %360 : vector<32x32xf32>
    %cst_194 = arith.constant dense<0.000000e+00> : vector<32xf32>
    %362 = vector.multi_reduction <add>, %361, %cst_194 [1] : vector<32x32xf32> to vector<32xf32>
    %363 = vector.shape_cast %362 : vector<32xf32> to vector<32x1xf32>
    %cst_195 = arith.constant 3.200000e+01 : f32
    %364 = vector.broadcast %cst_195 : f32 to vector<32x1xf32>
    %365 = arith.divf %363, %364 : vector<32x1xf32>
    %366 = vector.broadcast %358 : vector<32x1xf32> to vector<32x32xf32>
    %367 = arith.subf %352, %366 : vector<32x32xf32>
    %cst_196 = arith.constant 9.99999974E-6 : f32
    %368 = vector.broadcast %cst_196 : f32 to vector<32x1xf32>
    %369 = arith.addf %365, %368 : vector<32x1xf32>
    %370 = math.rsqrt %369 : vector<32x1xf32>
    %371 = vector.broadcast %370 : vector<32x1xf32> to vector<32x32xf32>
    %372 = arith.mulf %367, %371 : vector<32x32xf32>
    %373 = vector.broadcast %353 : vector<1x32xf32> to vector<32x32xf32>
    %374 = arith.mulf %372, %373 : vector<32x32xf32>
    %375 = vector.broadcast %354 : vector<1x32xf32> to vector<32x32xf32>
    %376 = arith.addf %374, %375 : vector<32x32xf32>
    %377 = arith.truncf %376 : vector<32x32xf32> to vector<32x32xbf16>
    %c0_197 = arith.constant 0 : index
    %c0_198 = arith.constant 0 : index
    %378 = vector.load %arg17[%c0_197, %c0_198] : memref<32x64xbf16, #tpu.memory_space<vmem>>, vector<32x64xbf16>
    %cst_199 = arith.constant dense<0.000000e+00> : vector<32x64xf32>
    %379 = tpu.matmul %377, %378, %cst_199 {dimension_numbers = #tpu.dot_dimension_numbers<[1], [0], [0], [1], [0, 0, 1, 1], [], []>} : vector<32x32xbf16>, vector<32x64xbf16>, vector<32x64xf32> -> vector<32x64xf32>
    %c0_200 = arith.constant 0 : index
    %c0_201 = arith.constant 0 : index
    %380 = vector.load %arg18[%c0_200, %c0_201] : memref<1x64xf32, #tpu.memory_space<vmem>>, vector<1x64xf32>
    %381 = vector.broadcast %380 : vector<1x64xf32> to vector<32x64xf32>
    %382 = arith.addf %379, %381 : vector<32x64xf32>
    %cst_202 = arith.constant 0.000000e+00 : f32
    %383 = vector.broadcast %cst_202 : f32 to vector<32x64xf32>
    %384 = arith.maximumf %382, %383 : vector<32x64xf32>
    %385 = arith.truncf %384 : vector<32x64xf32> to vector<32x64xbf16>
    %c0_203 = arith.constant 0 : index
    %c0_204 = arith.constant 0 : index
    %386 = vector.load %arg19[%c0_203, %c0_204] : memref<64x32xbf16, #tpu.memory_space<vmem>>, vector<64x32xbf16>
    %cst_205 = arith.constant dense<0.000000e+00> : vector<32x32xf32>
    %387 = tpu.matmul %385, %386, %cst_205 {dimension_numbers = #tpu.dot_dimension_numbers<[1], [0], [0], [1], [0, 0, 1, 1], [], []>} : vector<32x64xbf16>, vector<64x32xbf16>, vector<32x32xf32> -> vector<32x32xf32>
    %c0_206 = arith.constant 0 : index
    %c0_207 = arith.constant 0 : index
    %388 = vector.load %arg20[%c0_206, %c0_207] : memref<1x32xf32, #tpu.memory_space<vmem>>, vector<1x32xf32>
    %389 = vector.broadcast %388 : vector<1x32xf32> to vector<32x32xf32>
    %390 = arith.addf %387, %389 : vector<32x32xf32>
    %391 = arith.addf %352, %390 : vector<32x32xf32>
    %c0_208 = arith.constant 0 : index
    %c0_209 = arith.constant 0 : index
    %392 = vector.load %arg21[%c0_208, %c0_209] : memref<32x32xf32, #tpu.memory_space<vmem>>, vector<32x32xf32>
    tpu.vector_store %arg21[%c0_208, %c0_209], %391 {strides = array<i32>} : memref<32x32xf32, #tpu.memory_space<vmem>>, vector<32x32xf32>,
    return
  }
  func.func @transform_0(%arg0: i32) -> (i32, i32) {
    %c0_i32 = arith.constant 0 : i32
    %c0_i32_0 = arith.constant 0 : i32
    return %arg0, %c0_i32 : i32, i32
  }
  func.func @transform_1(%arg0: i32) -> (i32, i32) {
    %c0_i32 = arith.constant 0 : i32
    %c0_i32_0 = arith.constant 0 : i32
    return %arg0, %c0_i32 : i32, i32
  }
  func.func @transform_2(%arg0: i32) -> (i32, i32, i32) {
    %c0_i32 = arith.constant 0 : i32
    %c0_i32_0 = arith.constant 0 : i32
    %c0_i32_1 = arith.constant 0 : i32
    return %arg0, %c0_i32, %c0_i32_0 : i32, i32, i32
  }
  func.func @transform_3(%arg0: i32) -> (i32, i32) {
    %c0_i32 = arith.constant 0 : i32
    %c0_i32_0 = arith.constant 0 : i32
    %c0_i32_1 = arith.constant 0 : i32
    return %c0_i32, %c0_i32_0 : i32, i32
  }
  func.func @transform_4(%arg0: i32) -> (i32, i32) {
    %c0_i32 = arith.constant 0 : i32
    %c0_i32_0 = arith.constant 0 : i32
    %c0_i32_1 = arith.constant 0 : i32
    return %c0_i32, %c0_i32_0 : i32, i32
  }
  func.func @transform_5(%arg0: i32) -> (i32, i32) {
    %c0_i32 = arith.constant 0 : i32
    %c0_i32_0 = arith.constant 0 : i32
    %c0_i32_1 = arith.constant 0 : i32
    return %c0_i32, %c0_i32_0 : i32, i32
  }
  func.func @transform_6(%arg0: i32) -> (i32, i32) {
    %c0_i32 = arith.constant 0 : i32
    %c0_i32_0 = arith.constant 0 : i32
    %c0_i32_1 = arith.constant 0 : i32
    return %c0_i32, %c0_i32_0 : i32, i32
  }
  func.func @transform_7(%arg0: i32) -> (i32, i32) {
    %c0_i32 = arith.constant 0 : i32
    %c0_i32_0 = arith.constant 0 : i32
    %c0_i32_1 = arith.constant 0 : i32
    return %c0_i32, %c0_i32_0 : i32, i32
  }
  func.func @transform_8(%arg0: i32) -> (i32, i32) {
    %c0_i32 = arith.constant 0 : i32
    %c0_i32_0 = arith.constant 0 : i32
    %c0_i32_1 = arith.constant 0 : i32
    return %c0_i32, %c0_i32_0 : i32, i32
  }
  func.func @transform_9(%arg0: i32) -> (i32, i32) {
    %c0_i32 = arith.constant 0 : i32
    %c0_i32_0 = arith.constant 0 : i32
    %c0_i32_1 = arith.constant 0 : i32
    return %c0_i32, %c0_i32_0 : i32, i32
  }
  func.func @transform_10(%arg0: i32) -> (i32, i32) {
    %c0_i32 = arith.constant 0 : i32
    %c0_i32_0 = arith.constant 0 : i32
    %c0_i32_1 = arith.constant 0 : i32
    return %c0_i32, %c0_i32_0 : i32, i32
  }
  func.func @transform_11(%arg0: i32) -> (i32, i32) {
    %c0_i32 = arith.constant 0 : i32
    %c0_i32_0 = arith.constant 0 : i32
    %c0_i32_1 = arith.constant 0 : i32
    return %c0_i32, %c0_i32_0 : i32, i32
  }
  func.func @transform_12(%arg0: i32) -> (i32, i32, i32) {
    %c0_i32 = arith.constant 0 : i32
    %c0_i32_0 = arith.constant 0 : i32
    %c0_i32_1 = arith.constant 0 : i32
    %c0_i32_2 = arith.constant 0 : i32
    return %c0_i32, %c0_i32_0, %c0_i32_1 : i32, i32, i32
  }
  func.func @transform_13(%arg0: i32) -> (i32, i32) {
    %c0_i32 = arith.constant 0 : i32
    %c0_i32_0 = arith.constant 0 : i32
    %c0_i32_1 = arith.constant 0 : i32
    return %c0_i32, %c0_i32_0 : i32, i32
  }
  func.func @transform_14(%arg0: i32) -> (i32, i32) {
    %c0_i32 = arith.constant 0 : i32
    %c0_i32_0 = arith.constant 0 : i32
    %c0_i32_1 = arith.constant 0 : i32
    return %c0_i32, %c0_i32_0 : i32, i32
  }
  func.func @transform_15(%arg0: i32) -> (i32, i32) {
    %c0_i32 = arith.constant 0 : i32
    %c0_i32_0 = arith.constant 0 : i32
    %c0_i32_1 = arith.constant 0 : i32
    return %c0_i32, %c0_i32_0 : i32, i32
  }
  func.func @transform_16(%arg0: i32) -> (i32, i32) {
    %c0_i32 = arith.constant 0 : i32
    %c0_i32_0 = arith.constant 0 : i32
    %c0_i32_1 = arith.constant 0 : i32
    return %c0_i32, %c0_i32_0 : i32, i32
  }
  func.func @transform_17(%arg0: i32) -> (i32, i32) {
    %c0_i32 = arith.constant 0 : i32
    %c0_i32_0 = arith.constant 0 : i32
    %c0_i32_1 = arith.constant 0 : i32
    return %c0_i32, %c0_i32_0 : i32, i32
  }
  func.func @transform_18(%arg0: i32) -> (i32, i32) {
    %c0_i32 = arith.constant 0 : i32
    %c0_i32_0 = arith.constant 0 : i32
    %c0_i32_1 = arith.constant 0 : i32
    return %c0_i32, %c0_i32_0 : i32, i32
  }
  func.func @transform_19(%arg0: i32) -> (i32, i32) {
    %c0_i32 = arith.constant 0 : i32
    %c0_i32_0 = arith.constant 0 : i32
    %c0_i32_1 = arith.constant 0 : i32
    return %c0_i32, %c0_i32_0 : i32, i32
  }
  func.func @transform_20(%arg0: i32) -> (i32, i32) {
    %c0_i32 = arith.constant 0 : i32
    %c0_i32_0 = arith.constant 0 : i32
    return %arg0, %c0_i32 : i32, i32
  }
}

</mosaic_0001>

<bundles_post_ra>
// kernel: tpu_custom_call.1
= control target key start
LH: loop header
LB: loop body
LE: loop exit
PB: predicated region body
PF: predicated region fallthrough
CT: control target
= control target key end

     0   :  { %s4704_s0 = inlined_call_operand.vmem [shape: f32[32,32], index: 0, kind: input, shape index: {}]   ;;  %s4705_s1 = inlined_call_operand.vmem [shape: f32[32,1], index: 1, kind: input, shape index: {}]   ;;  %s4706_s2 = inlined_call_operand.hbm [shape: f32[2,1,16], index: 2, kind: input, shape index: {}]   ;;  %s4707_s3 = inlined_call_operand.hbm [shape: f32[1,32], index: 3, kind: input, shape index: {}]   ;;  %s4708_s4 = inlined_call_operand.hbm [shape: f32[1,32], index: 4, kind: input, shape index: {}]   ;;  %s4709_s5 = inlined_call_operand.vmem [shape: bf16[32,32], index: 5, kind: input, shape index: {}]   ;;  %s4710_s6 = inlined_call_operand.vmem [shape: bf16[32,32], index: 6, kind: input, shape index: {}]   ;;  %s4711_s7 = inlined_call_operand.vmem [shape: bf16[32,32], index: 7, kind: input, shape index: {}]   ;;  %s4712_s8 = inlined_call_operand.vmem [shape: f32[1,32], index: 8, kind: input, shape index: {}]   ;;  %s4713_s9 = inlined_call_operand.vmem [shape: f32[1,32], index: 9, kind: input, shape index: {}]   ;;  %s4714_s10 = inlined_call_operand.hbm [shape: f32[1,32], index: 10, kind: input, shape index: {}]   ;;  %s4715_s11 = inlined_call_operand.vmem [shape: f32[11,32], index: 11, kind: input, shape index: {}]   ;;  %s4716_s12 = inlined_call_operand.hbm [shape: bf16[4,8,32], index: 12, kind: input, shape index: {}]   ;;  %s4717_s13 = inlined_call_operand.hbm [shape: f32[1,32], index: 13, kind: input, shape index: {}]   ;;  %s4718_s14 = inlined_call_operand.vmem [shape: f32[1,32], index: 14, kind: input, shape index: {}]   ;;  %s4719_s15 = inlined_call_operand.vmem [shape: f32[1,32], index: 15, kind: input, shape index: {}]   ;;  %s4720_s16 = inlined_call_operand.vmem [shape: bf16[32,64], index: 16, kind: input, shape index: {}]   ;;  %s4721_s17 = inlined_call_operand.vmem [shape: f32[1,64], index: 17, kind: input, shape index: {}]   ;;  %s4722_s18 = inlined_call_operand.vmem [shape: bf16[64,32], index: 18, kind: input, shape index: {}]   ;;  %s4723_s19 = inlined_call_operand.vmem [shape: f32[1,32], index: 19, kind: input, shape index: {}]   ;;  %s4724_s20 = inlined_call_operand.hbm [shape: f32[32,32], index: 20, kind: output, shape index: {}]  }
   0x1   :  { %4731 = sst [smem:[#allocation21_spill]] %s4704_s0 }
   0x2   :  { %4732 = sst [smem:[#allocation22_spill]] %s4705_s1 }
   0x3   :  { %4733 = sst [smem:[#allocation23_spill]] %s4706_s2 }
   0x4   :  { %4734 = sst [smem:[#allocation24_spill]] %s4707_s3 }
   0x5   :  { %4735 = sst [smem:[#allocation25_spill]] %s4708_s4 }
   0x6   :  { %4736 = sst [smem:[#allocation26_spill]] %s4723_s19 }
   0x7   :  { %4737 = sst [smem:[#allocation27_spill]] %s4724_s20 }
   0x8   :  { %25 = vsyncpa [#allocation5], 0 }
   0x9   :  { %26 = vsyncpa [#allocation8], 0 }
   0xa   :  { %27 = vsyncpa [#allocation11], 0 }
   0xb   :  { %28 = vsyncpa [#allocation14], 0 }
   0xc   :  { %29 = vsyncpa [#allocation6], 0  ;;  %s3891_s1 = smov [#allocation7]   ;;  %s3892_s23 = smov [#allocation10]  }
   0xd   :  { %s52_s22 = sshll.u32 %s3891_s1, 4  ;;  %s82_s24 = sshll.u32 %s3892_s23, 4  ;;  %s53_s22 = int_to_ptr.vmem [resolvable:$true] %s52_s22  ;;  %s83_s24 = int_to_ptr.vmem [resolvable:$true] %s82_s24 }
   0xe   :  { %s4738_s3 = sld [smem:[#allocation24_spill]] }
  0x14   :  { %s3727_s26 = scalar_lea.hbm %s4738_s3, 16 }
  0x15   :  { %p3728_p0 = scmp.ne.s32.totalorder %s4738_s3, %s3727_s26  ;;  %p3731_p1 = scmp.lt.u32.totalorder %s3727_s26, %s4738_s3 }
  0x17   :  { %p3733_p2 = pnand %p3731_p1, %p3728_p0 }
  0x19   :  { %3736 = shalt.err (!%p3733_p2)
}
  0x1a   :  { %s3737_s30 = scalar_lea.vmem %s53_s22, 16  ;;  %s3741_s0 = scalar_lea.vmem %s53_s22, 32 }
  0x1b   :  { %p3738_p3 = scmp.ne.s32.totalorder %s53_s22, %s3737_s30  ;;  %p3742_p4 = scmp.lt.s32.totalorder %s53_s22, %s53_s22 }
  0x1c   :  { %p3743_p5 = scmp.lt.s32.totalorder %s3741_s0, %s3737_s30 }
  0x1e   :  { %p3744_p6 = por %p3743_p5, %p3742_p4 }
  0x20   :  { %p3745_p7 = pnand %p3744_p6, %p3738_p3 }
  0x22   :  { %3748 = shalt.err (!%p3745_p7)
}
  0x23   :  { %55 = dma.hbm_to_vmem [thread:$0]  %s4738_s3, 16, %s53_s22, [#allocation8]  }
  0x24   :  { %s3749_s25 = scalar_lea.hbm %s4714_s10, 16 }
  0x25   :  { %p3750_p8 = scmp.ne.s32.totalorder %s4714_s10, %s3749_s25  ;;  %p3753_p9 = scmp.lt.u32.totalorder %s3749_s25, %s4714_s10 }
  0x27   :  { %p3755_p10 = pnand %p3753_p9, %p3750_p8 }
  0x29   :  { %3758 = shalt.err (!%p3755_p10)
}
  0x2a   :  { %s3759_s29 = scalar_lea.vmem %s83_s24, 16  ;;  %s3763_s30 = scalar_lea.vmem %s83_s24, 32 }
  0x2b   :  { %p3760_p11 = scmp.ne.s32.totalorder %s83_s24, %s3759_s29  ;;  %p3764_p12 = scmp.lt.s32.totalorder %s83_s24, %s83_s24 }
  0x2c   :  { %p3765_p13 = scmp.lt.s32.totalorder %s3763_s30, %s3759_s29 }
  0x2e   :  { %p3766_p0 = por %p3765_p13, %p3764_p12 }
  0x30   :  { %p3767_p1 = pnand %p3766_p0, %p3760_p11 }
  0x32   :  { %3770 = shalt.err (!%p3767_p1)
}
  0x33   :  { %85 = dma.hbm_to_vmem [thread:$0]  %s4714_s10, 16, %s83_s24, [#allocation11]  }
  0x34   :  { %s3893_s0 = smov [#allocation4]   ;;  %s4739_s2 = sld [smem:[#allocation23_spill]] }
  0x35   :  { %s39_s21 = sshll.u32 %s3893_s0, 4  ;;  %s40_s21 = int_to_ptr.vmem [resolvable:$true] %s39_s21 }
  0x3a   :  { %s3771_s25 = scalar_lea.hbm %s4739_s2, 32 }
  0x3b   :  { %p3772_p2 = scmp.ne.s32.totalorder %s4739_s2, %s3771_s25  ;;  %p3775_p3 = scmp.lt.u32.totalorder %s3771_s25, %s4739_s2 }
  0x3d   :  { %p3777_p4 = pnand %p3775_p3, %p3772_p2 }
  0x3f   :  { %3780 = shalt.err (!%p3777_p4)
}
  0x40   :  { %s3781_s29 = scalar_lea.vmem %s40_s21, 32  ;;  %p3786_p6 = scmp.lt.s32.totalorder %s40_s21, %s40_s21 }
  0x41   :  { %p3782_p5 = scmp.ne.s32.totalorder %s40_s21, %s3781_s29  ;;  %p3787_p7 = scmp.lt.s32.totalorder %s3781_s29, %s3781_s29 }
  0x43   :  { %p3788_p8 = por %p3787_p7, %p3786_p6 }
  0x45   :  { %p3789_p9 = pnand %p3788_p8, %p3782_p5 }
  0x47   :  { %3792 = shalt.err (!%p3789_p9)
}
  0x48   :  { %s3894_s10 = smov 16   ;;  %s3895_s24 = smov 1  }
  0x49   :  { %45 = dma.hbm_to_vmem [thread:$0]  %s4739_s2, 32, %s40_s21, [#allocation5], %s3894_s10, %s3894_s10, %s3895_s24  }
  0x4a   :  { %s3896_s3 = smov [#allocation9]   ;;  %s3897_s1 = smov [#allocation12]  }
  0x4b   :  { %s62_s0 = sshll.u32 %s3896_s3, 4  ;;  %s93_s23 = sshll.u32 %s3897_s1, 4  ;;  %s63_s0 = int_to_ptr.vmem [resolvable:$true] %s62_s0  ;;  %s94_s23 = int_to_ptr.vmem [resolvable:$true] %s93_s23 }
  0x4c   :  { %s4740_s26 = sld [smem:[#allocation25_spill]] }
  0x52   :  { %s3793_s28 = scalar_lea.hbm %s4740_s26, 16 }
  0x53   :  { %p3794_p10 = scmp.ne.s32.totalorder %s4740_s26, %s3793_s28  ;;  %p3797_p11 = scmp.lt.u32.totalorder %s3793_s28, %s4740_s26 }
  0x55   :  { %p3799_p12 = pnand %p3797_p11, %p3794_p10 }
  0x57   :  { %3802 = shalt.err (!%p3799_p12)
}
  0x58   :  { %s3803_s21 = scalar_lea.vmem %s63_s0, 16  ;;  %s3807_s2 = scalar_lea.vmem %s63_s0, 32 }
  0x59   :  { %p3804_p13 = scmp.ne.s32.totalorder %s63_s0, %s3803_s21  ;;  %p3808_p0 = scmp.lt.s32.totalorder %s63_s0, %s63_s0 }
  0x5a   :  { %p3809_p1 = scmp.lt.s32.totalorder %s3807_s2, %s3803_s21 }
  0x5c   :  { %p3810_p2 = por %p3809_p1, %p3808_p0 }
  0x5e   :  { %p3811_p3 = pnand %p3810_p2, %p3804_p13 }
  0x60   :  { %3814 = shalt.err (!%p3811_p3)
}
  0x61   :  { %65 = dma.hbm_to_vmem [thread:$0]  %s4740_s26, 16, %s63_s0, [#allocation8]  }
  0x62   :  { %s3815_s19 = scalar_lea.hbm %s4716_s12, 256 }
  0x63   :  { %p3816_p4 = scmp.ne.s32.totalorder %s4716_s12, %s3815_s19  ;;  %p3819_p5 = scmp.lt.u32.totalorder %s3815_s19, %s4716_s12 }
  0x65   :  { %p3821_p6 = pnand %p3819_p5, %p3816_p4 }
  0x67   :  { %3824 = shalt.err (!%p3821_p6)
}
  0x68   :  { %s3825_s27 = scalar_lea.vmem %s94_s23, 256  ;;  %p3830_p8 = scmp.lt.s32.totalorder %s94_s23, %s94_s23 }
  0x69   :  { %p3826_p7 = scmp.ne.s32.totalorder %s94_s23, %s3825_s27  ;;  %p3831_p9 = scmp.lt.s32.totalorder %s3825_s27, %s3825_s27 }
  0x6b   :  { %p3832_p10 = por %p3831_p9, %p3830_p8 }
  0x6d   :  { %p3833_p11 = pnand %p3832_p10, %p3826_p7 }
  0x6f   :  { %3836 = shalt.err (!%p3833_p11)
}
  0x70   :  { %s3898_s0 = smov 64   ;;  %s3899_s26 = smov 4  }
  0x71   :  { %99 = dma.hbm_to_vmem [thread:$0]  %s4716_s12, 256, %s94_s23, [#allocation11], %s3898_s0, %s3898_s0, %s3899_s26  }
  0x72   :  { %s3900_s29 = smov [#allocation13]   ;;  %s3837_s24 = scalar_lea.hbm %s4717_s13, 16 }
  0x73   :  { %s106_s21 = sshll.u32 %s3900_s29, 4  ;;  %p3838_p12 = scmp.ne.s32.totalorder %s4717_s13, %s3837_s24  ;;  %s107_s21 = int_to_ptr.vmem [resolvable:$true] %s106_s21 }
  0x74   :  { %p3841_p13 = scmp.lt.u32.totalorder %s3837_s24, %s4717_s13 }
  0x76   :  { %p3843_p0 = pnand %p3841_p13, %p3838_p12 }
  0x78   :  { %3846 = shalt.err (!%p3843_p0)
}
  0x79   :  { %s3847_s3 = scalar_lea.vmem %s107_s21, 16  ;;  %s3851_s12 = scalar_lea.vmem %s107_s21, 32 }
  0x7a   :  { %p3848_p1 = scmp.ne.s32.totalorder %s107_s21, %s3847_s3  ;;  %p3852_p2 = scmp.lt.s32.totalorder %s107_s21, %s107_s21 }
  0x7b   :  { %p3853_p3 = scmp.lt.s32.totalorder %s3851_s12, %s3847_s3 }
  0x7d   :  { %p3854_p4 = por %p3853_p3, %p3852_p2 }
  0x7f   :  { %p3855_p5 = pnand %p3854_p4, %p3848_p1 }
  0x81   :  { %3858 = shalt.err (!%p3855_p5)
}
  0x82   :  { %109 = dma.hbm_to_vmem [thread:$0]  %s4717_s13, 16, %s107_s21, [#allocation14]  }
  0x83   :  { %3881 = dma.done.wait [#allocation5], 32  }
  0x84   :  { %3882 = vsyncadd [#allocation5], 4294967264 }
  0x85   :  { %3883 = dma.done.wait [#allocation8], 32  }
  0x86   :  { %3884 = vsyncadd [#allocation8], 4294967264 }
  0x87   :  { %3885 = dma.done.wait [#allocation11], 272  }
  0x88   :  { %3886 = vsyncadd [#allocation11], 4294967024 }
  0x89   :  { %3887 = dma.done.wait [#allocation14], 16  }
  0x8a   :  { %3888 = vsyncadd [#allocation14], 4294967280  ;;  %vm151_vm0 = vcmask 261120   ;;  %s4741_s0 = sld [smem:[#allocation21_spill]]  ;;  %v3631_v28 = vld [vmem:[%s4709_s5] sm:$0xff]   ;;  %v3633_v30 = vld [vmem:[%s4709_s5 + $0x8] sm:$0xff]  }
  0x8b   :  { %v3632_v29 = vld [vmem:[%s4710_s6] sm:$0xff]   ;;  %3266 = vmatprep.subr.bf16.mxu0 %v3631_v28  ;;  %v3634_v31 = vld [vmem:[%s4710_s6 + $0x8] sm:$0xff]   ;;  %vm619_vm1 = vcmask 64512   ;;  %vm707_vm3 = vcmask 130048   ;;  %vm816_vm4 = vcmask 1043456   ;;  %vm3903_vm5 = vmmov 0  }
  0x8c   :  { %3274 = vmatprep.subr.bf16.mxu1 %v3632_v29  ;;  %3267 = vmatpush3.bf16.msra.mxu0 %v3631_v28  ;;  %v3635_v32 = vld [vmem:[%s4711_s7] sm:$0xff]   ;;  %vm4145_vm2 = vmpackc.low %vm619_vm1, %vm619_vm1  ;;  %s4744_s29 = sld [smem:[#allocation22_spill]]  ;;  %vm2967_vm6 = vcmask 523264   ;;  %s3907_s2 = smov [#allocation15]  }
  0x8d   :  { %3275 = vmatpush3.bf16.msra.mxu1 %v3632_v29  ;;  %3268 = vmatprep.subr.bf16.mxu0 %v3633_v30  ;;  %v3051_v47 = vld [vmem:[#allocation7] ss:$0 sm:$0xff]  ;;  %v3052_v53 = vld [vmem:[#allocation9] ss:$0 sm:$0xff]  ;;  %s3036_s10 = sshll.u32 %s3907_s2, 4  ;;  %s3037_s10 = int_to_ptr.vmem [resolvable:$true] %s3036_s10 }
  0x8e   :  { %3276 = vmatprep.subr.bf16.mxu1 %v3634_v31  ;;  %p3864_p7 = scmp.lt.s32.totalorder %s3037_s10, %s3037_s10 }
  0x90   :  { %v141_v0 = vld [vmem:[%s4741_s0] sm:$0xff]  ;;  %v143_v1 = vld [vmem:[%s4741_s0 + $0x10] sm:$0xff]  ;;  %v142_v2 = vld [vmem:[%s4741_s0 + $0x8] sm:$0xff]  ;;  %3269 = vmatpush3.bf16.msra.mxu0 %v3633_v30 }
  0x91   :  { %v152_v3 = vsel %vm151_vm0, %v141_v0, 0.0  ;;  %v158_v4 = vsel %vm151_vm0, %v143_v1, 0.0  ;;  %v144_v5 = vld [vmem:[%s4741_s0 + $0x18] sm:$0xff]  ;;  %v155_v6 = vsel %vm151_vm0, %v142_v2, 0.0  ;;  %3277 = vmatpush3.bf16.msra.mxu1 %v3634_v31  ;;  %3282 = vmatprep.subr.bf16.mxu0 %v3635_v32 }
  0x92   :  { %153 = vadd.xlane.f32.xlu0 %v152_v3  ;;  %159 = vadd.xlane.f32.xlu1 %v158_v4  ;;  %v161_v7 = vsel %vm151_vm0, %v144_v5, 0.0  ;;  %v3058_v3 = vld [vmem:[%s4713_s9] ss:$0 sm:$0xff]  ;;  %s3905_s9 = smov 104  }
  0x96   :  { %156 = vadd.xlane.f32.xlu0 %v155_v6  ;;  %162 = vadd.xlane.f32.xlu1 %v161_v7 }
 0x11f   :  { %v154_v8 = vpop.xlane.xlu0 %153  ;;  %v160_v9 = vpop.xlane.xlu1 %159 }
 0x120   :  { %v165_v10 = vmul.f32 0.03125, %v154_v8  ;;  %v167_v11 = vmul.f32 0.03125, %v160_v9 }
 0x122   :  { %v169_v12 = vsub.f32 %v141_v0, %v165_v10  ;;  %v171_v13 = vsub.f32 %v143_v1, %v167_v11  ;;  %v3636_v1 = vld [vmem:[%s4711_s7 + $0x8] sm:$0xff]   ;;  %s3901_s7 = smov 120  }
 0x123   :  { %v157_v14 = vpop.xlane.xlu0 %156  ;;  %v163_v15 = vpop.xlane.xlu1 %162 }
 0x124   :  { %v166_v16 = vmul.f32 0.03125, %v157_v14  ;;  %v168_v17 = vmul.f32 0.03125, %v163_v15  ;;  %v173_v18 = vmul.f32 %v169_v12, %v169_v12  ;;  %v175_v19 = vmul.f32 %v171_v13, %v171_v13 }
 0x126   :  { %v170_v20 = vsub.f32 %v142_v2, %v166_v16  ;;  %v172_v21 = vsub.f32 %v144_v5, %v168_v17  ;;  %v177_v22 = vsel %vm151_vm0, %v173_v18, 0.0  ;;  %v183_v23 = vsel %vm151_vm0, %v175_v19, 0.0  ;;  %v3053_v2 = vld [vmem:[%s4712_s8] ss:$0 sm:$0xff]  ;;  %s3904_s8 = smov 112  }
 0x127   :  { %178 = vadd.xlane.f32.xlu0 %v177_v22 }
 0x128   :  { %v174_v24 = vmul.f32 %v170_v20, %v170_v20  ;;  %v176_v25 = vmul.f32 %v172_v21, %v172_v21 }
 0x12a   :  { %v180_v26 = vsel %vm151_vm0, %v174_v24, 0.0  ;;  %v186_v27 = vsel %vm151_vm0, %v176_v25, 0.0 }
 0x12b   :  { %184 = vadd.xlane.f32.xlu0 %v183_v23  ;;  %181 = vadd.xlane.f32.xlu1 %v180_v26  ;;  %v3063_v23 = vld [vmem:[#allocation10] ss:$0 sm:$0xff] }
 0x12f   :  { %187 = vadd.xlane.f32.xlu1 %v186_v27 }
 0x1b4   :  { %v179_v33 = vpop.xlane.xlu0 %178 }
 0x1b5   :  { %v189_v34 = vmul.f32 0.03125, %v179_v33 }
 0x1b7   :  { %v193_v35 = vadd.f32 1e-05, %v189_v34 }
 0x1b8   :  { %v182_v36 = vpop.xlane.xlu1 %181  ;;  %v185_v37 = vpop.xlane.xlu0 %184 }
 0x1b9   :  { %3643 = vrsqrt.f32 %v193_v35  ;;  %v190_v38 = vmul.f32 0.03125, %v182_v36  ;;  %v191_v39 = vmul.f32 0.03125, %v185_v37  ;;  %v4175_v37 = vld [vmem:[#allocation4] ss:$0 sm:$0xff] }
 0x1bb   :  { %v194_v40 = vadd.f32 1e-05, %v190_v38  ;;  %v195_v41 = vadd.f32 1e-05, %v191_v39 }
 0x1bc   :  { %v188_v42 = vpop.xlane.xlu1 %187 }
 0x1bd   :  { %3645 = vrsqrt.f32 %v194_v40  ;;  %v192_v43 = vmul.f32 0.03125, %v188_v42 }
 0x1be   :  { %3647 = vrsqrt.f32 %v195_v41 }
 0x1bf   :  { %v196_v44 = vadd.f32 1e-05, %v192_v43 }
 0x1c1   :  { %3649 = vrsqrt.f32 %v196_v44 }
 0x1c3   :  { %v3644_v45 = vpop.eup %3643 }
 0x1c4   :  { %v201_v46 = vmul.f32 %v3644_v45, %v169_v12 }
 0x1c6   :  { %v211_v51 = vmul.f32 %v3051_v47, %v201_v46 }
 0x1c7   :  { %v3646_v48 = vpop.eup %3645 }
 0x1c8   :  { %v3648_v49 = vpop.eup %3647  ;;  %v202_v50 = vmul.f32 %v3646_v48, %v170_v20  ;;  %v221_v57 = vadd.f32 %v3052_v53, %v211_v51 }
 0x1c9   :  { %v203_v52 = vmul.f32 %v3648_v49, %v171_v13 }
 0x1ca   :  { %v212_v54 = vmul.f32 %v3051_v47, %v202_v50 }
 0x1cb   :  { %v3650_v55 = vpop.eup %3649  ;;  %v213_v59 = vmul.f32 %v3051_v47, %v203_v52 }
 0x1cc   :  { %v204_v56 = vmul.f32 %v3650_v55, %v172_v21  ;;  %v222_v58 = vadd.f32 %v3052_v53, %v212_v54 }
 0x1cd   :  { %v223_v62 = vadd.f32 %v3052_v53, %v213_v59 }
 0x1ce   :  { %v225_v60 = vpack.c.bf16 %v222_v58, %v221_v57  ;;  %v214_v61 = vmul.f32 %v3051_v47, %v204_v56 }
 0x1d0   :  { %3270 = vmatprep.mubr.msk.bf16.mxu0 %vm151_vm0, %v225_v60  ;;  %3278 = vmatprep.mubr.msk.bf16.mxu1 %vm151_vm0, %v225_v60  ;;  %v224_v63 = vadd.f32 %v3052_v53, %v214_v61 }
 0x1d2   :  { %v226_v0 = vpack.c.bf16 %v224_v63, %v223_v62 }
 0x1d4   :  { %3271 = vmatmul.mubr.msk.bf16.vlgmr.msra.gmra.mrb[0].mxu0 %vm151_vm0, %v226_v0  ;;  %3279 = vmatmul.mubr.msk.bf16.vlgmr.msra.gmra.mrb[0].mxu1 %vm151_vm0, %v226_v0 }
 0x1d5   :  { %3283 = vmatpush3.bf16.msra.mxu0 %v3635_v32  ;;  %3286 = vmatprep.mubr.msk.bf16.mxu0 %vm151_vm0, %v225_v60 }
 0x1d6   :  { %3284 = vmatprep.subr.bf16.mxu0 %v3636_v1 }
 0x1d9   :  { %3285 = vmatpush3.bf16.msra.mxu0 %v3636_v1 }
 0x1dc   :  { %3287 = vmatmul.mubr.msk.bf16.vlgmr.msra.gmra.mrb[4].mxu0 %vm151_vm0, %v226_v0 }
 0x2a7   :  { %v3272_v4 = vpop.f32.mrb[0].mxu0  ;;  %v3280_v5 = vpop.f32.mrb[0].mxu1 }
 0x2a8   :  { %v4137_v6 = vadd.f32 %v3272_v4, %v3053_v2  ;;  %v375_v7 = vadd.f32 %v3280_v5, %v3058_v3  ;;  %v290_v8 = vpop.f32.mrb[1].mxu0  ;;  %v366_v9 = vpop.f32.mrb[1].mxu1 }
 0x2a9   :  { %v291_v10 = vadd.f32 %v3053_v2, %v290_v8  ;;  %v3273_v11 = vpop.f32.mrb[2].mxu0  ;;  %v3281_v12 = vpop.f32.mrb[2].mxu1  ;;  %v367_v18 = vadd.f32 %v3058_v3, %v366_v9 }
 0x2aa   :  { %v4139_v13 = vadd.f32 %v3273_v11, %v3053_v2  ;;  %v378_v14 = vadd.f32 %v3281_v12, %v3058_v3  ;;  %v293_v15 = vpop.f32.mrb[3].mxu0  ;;  %v369_v16 = vpop.f32.mrb[3].mxu1 }
 0x2ab   :  { %v4141_v17 = vmul.f32 0.35355338, %v291_v10  ;;  %v370_v19 = vadd.f32 %v3058_v3, %v369_v16  ;;  %v294_v29 = vadd.f32 %v3053_v2, %v293_v15  ;;  %v812_v2 = vld [vmem:[#allocation12] sm:$0xf]  ;;  %v3902_v3 = vmov 0.0  }
 0x2ac   :  { %v4149_v21 = vpack.i.bf16 %v378_v14, %v375_v7  ;;  %v4151_v22 = vpack.c.bf16 %v378_v14, %v375_v7  ;;  %477 = vst.msk [vmem:[#allocation2] sm:$0xff] %vm151_vm0, %v3902_v3  ;;  %478 = vst.msk [vmem:[#allocation2 + $0x8] sm:$0xff] %vm151_vm0, %v3902_v3  ;;  %v818_v4 = vsel %vm816_vm4, %v812_v2, 0 }
 0x2ad   :  { %3294 = vmatprep.mubr.msk.f32.mxu0 %vm619_vm1, %v4141_v17  ;;  %v3470_v24 = vpack.c.bf16 %v370_v19, %v367_v18  ;;  %v4155_v25 = vpack.i.bf16 %v370_v19, %v367_v18  ;;  %v4169_v35 = vmul.f32 0.35355338, %v294_v29  ;;  %479 = vst.msk [vmem:[#allocation2 + $0x10] sm:$0xff] %vm151_vm0, %v3902_v3  ;;  %480 = vst.msk [vmem:[#allocation2 + $0x18] sm:$0xff] %vm151_vm0, %v3902_v3 }
 0x2af   :  { %v3288_v26 = vpop.f32.mrb[4].mxu0  ;;  %3472 = vmatprep.subr.msk.bf16.mxu0 %vm4145_vm2, %v3470_v24 }
 0x2b0   :  { %v4159_v27 = vadd.f32 %v3288_v26, %v3063_v23  ;;  %v438_v28 = vpop.f32.mrb[5].mxu0  ;;  %3475 = vmatpush3.bf16.xpose.msk.msra.mxu0 %vm4145_vm2, %v3470_v24 }
 0x2b1   :  { %v3289_v30 = vpop.f32.mrb[6].mxu0  ;;  %v4165_v33 = vadd.f32 %v3063_v23, %v438_v28  ;;  %3304 = vmatprep.subr.bf16.mxu0 %v3902_v3 }
 0x2b2   :  { %v4163_v31 = vadd.f32 %v3289_v30, %v3063_v23  ;;  %v441_v32 = vpop.f32.mrb[7].mxu0 }
 0x2b3   :  { %v4167_v34 = vadd.f32 %v3063_v23, %v441_v32 }
 0x2b5   :  { %v3476_v36 = vpack.c.bf16 %v4167_v34, %v4165_v33  ;;  %v4219_v16 = vpack.i.bf16 %v4167_v34, %v4165_v33 }
 0x2b7   :  { %3295 = vmatmul.mubr.msk.f32.vlgmr.msra.gmra.mrb[8].mxu0 %vm619_vm1, %v4169_v35  ;;  %3477 = vmatprep.subr.bf16.mxu1 %v3476_v36 }
 0x2b8   :  { %3479 = vmatpush3.bf16.msra.mxu1 %v3476_v36  ;;  %3305 = vmatpush3.bf16.msra.mxu0 %v818_v4 }
 0x2b9   :  { %3306 = vmatprep.mubr.msk.bf16.mxu0 %vm3903_vm5, %v3902_v3 }
 0x38a   :  { %v3296_v38 = vpop.f32.mrb[8].mxu0 }
 0x38b   :  { %v704_v39 = vadd.f32 %v3296_v38, %v4175_v37  ;;  %v698_v40 = vpop.f32.mrb[9].mxu0 }
 0x38c   :  { %v699_v41 = vadd.f32 %v4175_v37, %v698_v40 }
 0x38d   :  { %v711_v42 = vsel %vm707_vm3, %v704_v39, -inf }
 0x38e   :  { %712 = vmax.xlane.f32.xlu1 %v711_v42  ;;  %v708_v43 = vsel %vm707_vm3, %v699_v41, -inf }
 0x38f   :  { %709 = vmax.xlane.f32.xlu0 %v708_v43 }
 0x41b   :  { %v713_v44 = vpop.xlane.xlu1 %712 }
 0x41c   :  { %v715_v45 = vsub.f32 %v704_v39, %v713_v44  ;;  %v710_v46 = vpop.xlane.xlu0 %709 }
 0x41d   :  { %v714_v47 = vsub.f32 %v699_v41, %v710_v46 }
 0x41e   :  { %v718_v48 = vmul.f32 1.442695, %v715_v45 }
 0x41f   :  { %v716_v49 = vmul.f32 1.442695, %v714_v47 }
 0x420   :  { %3651 = vpow2.f32 %v718_v48 }
 0x421   :  { %3653 = vpow2.f32 %v716_v49 }
 0x42a   :  { %v3652_v50 = vpop.eup %3651 }
 0x42b   :  { %v3654_v51 = vpop.eup %3653  ;;  %v723_v52 = vsel %vm707_vm3, %v3652_v50, 0.0 }
 0x42c   :  { %724 = vadd.xlane.f32.xlu1 %v723_v52  ;;  %v720_v53 = vsel %vm707_vm3, %v3654_v51, 0.0 }
 0x42d   :  { %721 = vadd.xlane.f32.xlu0 %v720_v53 }
 0x43d   :  { %863 = vrot.lane.b32.xlu1 %v4141_v17, %s3901_s7 }
 0x441   :  { %865 = vrot.lane.b32.xlu1 %v4169_v35, %s3901_s7 }
 0x443   :  { %3570 = vrot.lane.b32.xlu0 %v4155_v25, %s3901_s7 }
 0x4b9   :  { %v725_v54 = vpop.xlane.xlu1 %724 }
 0x4ba   :  { %3655 = vrcp.f32 %v725_v54  ;;  %v722_v55 = vpop.xlane.xlu0 %721 }
 0x4bb   :  { %3657 = vrcp.f32 %v722_v55 }
 0x4bd   :  { %v864_v0 = vpop.permute.xlu1 %863 }
 0x4be   :  { %v3571_v56 = vpop.permute.xlu0 %3570 }
 0x4bf   :  { %v3573_v57 = vunpack.i.h.bf16 %v3571_v56  ;;  %v3572_v58 = vunpack.i.l.bf16 %v3571_v56 }
 0x4c1   :  { %v3480_v59 = vpack.c.bf16 %v3573_v57, %v3572_v58  ;;  %v866_v1 = vpop.permute.xlu1 %865  ;;  %v1067_v58 = vld [vmem:[#allocation12 + $0x4] sm:$0xf] }
 0x4c3   :  { %3482 = vmatprep.subr.msk.bf16.mxu1 %vm4145_vm2, %v3480_v59 }
 0x4c4   :  { %v3656_v60 = vpop.eup %3655 }
 0x4c5   :  { %v3658_v61 = vpop.eup %3657  ;;  %v729_v63 = vmul.f32 %v3656_v60, %v3652_v50 }
 0x4c6   :  { %v727_v62 = vmul.f32 %v3658_v61, %v3654_v51 }
 0x4c8   :  { %3301 = vmatprep.mubr.msk.f32.mxu1 %vm707_vm3, %v727_v62 }
 0x4c9   :  { %3302 = vmatmul.mubr.msk.f32.vlgmr.msra.gmra.mrb[4].mxu1 %vm707_vm3, %v729_v63 }
 0x4ca   :  { %3485 = vmatpush3.bf16.xpose.msk.msra.mxu1 %vm4145_vm2, %v3480_v59  ;;  %3314 = vmatprep.mubr.msk.f32.mxu1 %vm619_vm1, %v864_v0  ;;  %v1072_v59 = vsel %vm816_vm4, %v1067_v58, 0 }
 0x4cb   :  { %3324 = vmatprep.subr.bf16.mxu1 %v3902_v3 }
 0x4d1   :  { %3315 = vmatmul.mubr.msk.f32.vlgmr.msra.gmra.mrb[6].mxu1 %vm619_vm1, %v866_v1 }
 0x4d2   :  { %3326 = vmatprep.mubr.msk.bf16.mxu1 %vm3903_vm5, %v3902_v3  ;;  %3325 = vmatpush3.bf16.msra.mxu1 %v1072_v59 }
 0x59c   :  { %v3303_v5 = vpop.f32.mrb[4].mxu1 }
 0x59d   :  { %v802_v7 = vpop.f32.mrb[5].mxu1 }
 0x59e   :  { %v811_v8 = vpack.c.bf16 %v3303_v5, %v802_v7 }
 0x5a0   :  { %3307 = vmatmul.mubr.msk.bf16.vlgmr.msra.gmra.mrb[12].mxu0 %vm619_vm1, %v811_v8 }
 0x5a4   :  { %v3316_v9 = vpop.f32.mrb[6].mxu1 }
 0x5a5   :  { %v951_v10 = vadd.f32 %v3316_v9, %v4175_v37  ;;  %v945_v11 = vpop.f32.mrb[7].mxu1 }
 0x5a6   :  { %v946_v12 = vadd.f32 %v4175_v37, %v945_v11 }
 0x5a7   :  { %v957_v14 = vsel %vm707_vm3, %v951_v10, -inf }
 0x5a8   :  { %958 = vmax.xlane.f32.xlu0 %v957_v14  ;;  %v954_v15 = vsel %vm707_vm3, %v946_v12, -inf }
 0x5a9   :  { %955 = vmax.xlane.f32.xlu1 %v954_v15 }
 0x5ba   :  { %3575 = vrot.lane.b32.xlu1 %v4219_v16, %s3901_s7 }
 0x5be   :  { %1117 = vrot.lane.b32.xlu1 %v4141_v17, %s3904_s8 }
 0x5c2   :  { %1119 = vrot.lane.b32.xlu1 %v4169_v35, %s3904_s8 }
 0x635   :  { %v959_v18 = vpop.xlane.xlu0 %958 }
 0x636   :  { %v961_v19 = vsub.f32 %v951_v10, %v959_v18  ;;  %v956_v23 = vpop.xlane.xlu1 %955 }
 0x637   :  { %v960_v24 = vsub.f32 %v946_v12, %v956_v23 }
 0x638   :  { %v964_v26 = vmul.f32 1.442695, %v961_v19 }
 0x639   :  { %v962_v28 = vmul.f32 1.442695, %v960_v24 }
 0x63a   :  { %3659 = vpow2.f32 %v964_v26  ;;  %v3576_v29 = vpop.permute.xlu1 %3575 }
 0x63b   :  { %v3578_v30 = vunpack.i.h.bf16 %v3576_v29  ;;  %v3577_v32 = vunpack.i.l.bf16 %v3576_v29  ;;  %3661 = vpow2.f32 %v962_v28 }
 0x63d   :  { %v3486_v36 = vpack.c.bf16 %v3578_v30, %v3577_v32 }
 0x63e   :  { %v1118_v56 = vpop.permute.xlu1 %1117 }
 0x63f   :  { %3487 = vmatprep.subr.bf16.mxu0 %v3486_v36 }
 0x640   :  { %3489 = vmatpush3.bf16.msra.mxu0 %v3486_v36 }
 0x642   :  { %v1120_v57 = vpop.permute.xlu1 %1119 }
 0x644   :  { %v3660_v38 = vpop.eup %3659 }
 0x645   :  { %v969_v39 = vsel %vm707_vm3, %v3660_v38, 0.0  ;;  %v3662_v40 = vpop.eup %3661 }
 0x646   :  { %970 = vadd.xlane.f32.xlu0 %v969_v39  ;;  %v966_v41 = vsel %vm707_vm3, %v3662_v40, 0.0 }
 0x64a   :  { %967 = vadd.xlane.f32.xlu0 %v966_v41 }
 0x660   :  { %3580 = vrot.lane.b32.xlu0 %v4155_v25, %s3904_s8 }
 0x673   :  { %v4231_v42 = vpop.f32.mrb[12].mxu0 }
 0x674   :  { %v3308_v43 = vpop.f32.mrb[13].mxu0 }
 0x675   :  { %v4233_v44 = vpop.f32.mrb[14].mxu0 }
 0x676   :  { %v3309_v45 = vpop.f32.mrb[15].mxu0 }
 0x6d3   :  { %v971_v46 = vpop.xlane.xlu0 %970 }
 0x6d4   :  { %3663 = vrcp.f32 %v971_v46 }
 0x6d7   :  { %v968_v47 = vpop.xlane.xlu0 %967 }
 0x6d8   :  { %3665 = vrcp.f32 %v968_v47 }
 0x6db   :  { %v3581_v48 = vpop.permute.xlu0 %3580 }
 0x6dc   :  { %v3583_v49 = vunpack.i.h.bf16 %v3581_v48  ;;  %v3582_v50 = vunpack.i.l.bf16 %v3581_v48  ;;  %v1571_v48 = vld [vmem:[#allocation12 + $0xc] sm:$0xf] }
 0x6de   :  { %v3490_v51 = vpack.c.bf16 %v3583_v49, %v3582_v50  ;;  %v3664_v52 = vpop.eup %3663  ;;  %v1576_v49 = vsel %vm816_vm4, %v1571_v48, 0 }
 0x6df   :  { %v975_v55 = vmul.f32 %v3664_v52, %v3660_v38  ;;  %v1319_v52 = vld [vmem:[#allocation12 + $0x8] sm:$0xf] }
 0x6e0   :  { %3492 = vmatprep.subr.msk.bf16.mxu0 %vm4145_vm2, %v3490_v51 }
 0x6e2   :  { %v3666_v53 = vpop.eup %3665 }
 0x6e3   :  { %v973_v54 = vmul.f32 %v3666_v53, %v3662_v40  ;;  %v1324_v53 = vsel %vm816_vm4, %v1319_v52, 0 }
 0x6e5   :  { %3321 = vmatprep.mubr.msk.f32.mxu0 %vm707_vm3, %v973_v54 }
 0x6e6   :  { %3322 = vmatmul.mubr.msk.f32.vlgmr.msra.gmra.mrb[10].mxu0 %vm707_vm3, %v975_v55 }
 0x6e7   :  { %3495 = vmatpush3.bf16.xpose.msk.msra.mxu0 %vm4145_vm2, %v3490_v51  ;;  %3334 = vmatprep.mubr.msk.f32.mxu0 %vm619_vm1, %v1118_v56  ;;  %v4278_v51 = vpack.c.bf16 %v4163_v31, %v4159_v27 }
 0x6e8   :  { %3344 = vmatprep.subr.bf16.mxu0 %v3902_v3 }
 0x6ee   :  { %3335 = vmatmul.mubr.msk.f32.vlgmr.msra.gmra.mrb[16].mxu0 %vm619_vm1, %v1120_v57 }
 0x6ef   :  { %3346 = vmatprep.mubr.msk.bf16.mxu0 %vm3903_vm5, %v3902_v3  ;;  %3345 = vmatpush3.bf16.msra.mxu0 %v1324_v53 }
 0x7b9   :  { %v3323_v60 = vpop.f32.mrb[10].mxu0 }
 0x7ba   :  { %v1056_v61 = vpop.f32.mrb[11].mxu0 }
 0x7bb   :  { %v1065_v62 = vpack.c.bf16 %v3323_v60, %v1056_v61 }
 0x7bd   :  { %3327 = vmatmul.mubr.msk.bf16.vlgmr.msra.gmra.mrb[8].mxu1 %vm619_vm1, %v1065_v62 }
 0x7c1   :  { %v3336_v63 = vpop.f32.mrb[16].mxu0 }
 0x7c2   :  { %v1205_v0 = vadd.f32 %v3336_v63, %v4175_v37  ;;  %v1199_v1 = vpop.f32.mrb[17].mxu0  ;;  %v4294_v63 = vmul.f32 0.35355338, %v4139_v13 }
 0x7c3   :  { %v1200_v2 = vadd.f32 %v4175_v37, %v1199_v1 }
 0x7c4   :  { %v1211_v4 = vsel %vm707_vm3, %v1205_v0, -inf }
 0x7c5   :  { %1212 = vmax.xlane.f32.xlu0 %v1211_v4  ;;  %v1208_v5 = vsel %vm707_vm3, %v1200_v2, -inf }
 0x7c6   :  { %1209 = vmax.xlane.f32.xlu1 %v1208_v5 }
 0x7d7   :  { %3585 = vrot.lane.b32.xlu1 %v4219_v16, %s3904_s8 }
 0x7db   :  { %1369 = vrot.lane.b32.xlu1 %v4141_v17, %s3905_s9 }
 0x7df   :  { %1371 = vrot.lane.b32.xlu1 %v4169_v35, %s3905_s9 }
 0x852   :  { %v1213_v7 = vpop.xlane.xlu0 %1212 }
 0x853   :  { %v1215_v8 = vsub.f32 %v1205_v0, %v1213_v7  ;;  %v1210_v9 = vpop.xlane.xlu1 %1209 }
 0x854   :  { %v1214_v10 = vsub.f32 %v1200_v2, %v1210_v9 }
 0x855   :  { %v1218_v11 = vmul.f32 1.442695, %v1215_v8 }
 0x856   :  { %v1216_v12 = vmul.f32 1.442695, %v1214_v10 }
 0x857   :  { %3667 = vpow2.f32 %v1218_v11  ;;  %v3586_v14 = vpop.permute.xlu1 %3585 }
 0x858   :  { %v3588_v15 = vunpack.i.h.bf16 %v3586_v14  ;;  %v3587_v18 = vunpack.i.l.bf16 %v3586_v14  ;;  %3669 = vpow2.f32 %v1216_v12 }
 0x85a   :  { %v3496_v19 = vpack.c.bf16 %v3588_v15, %v3587_v18 }
 0x85b   :  { %v1370_v47 = vpop.permute.xlu1 %1369 }
 0x85c   :  { %3497 = vmatprep.subr.bf16.mxu1 %v3496_v19 }
 0x85d   :  { %3499 = vmatpush3.bf16.msra.mxu1 %v3496_v19 }
 0x85f   :  { %v1372_v50 = vpop.permute.xlu1 %1371 }
 0x861   :  { %v3668_v23 = vpop.eup %3667 }
 0x862   :  { %v1223_v17 = vsel %vm707_vm3, %v3668_v23, 0.0  ;;  %v3670_v24 = vpop.eup %3669 }
 0x863   :  { %1224 = vadd.xlane.f32.xlu0 %v1223_v17  ;;  %v1220_v35 = vsel %vm707_vm3, %v3670_v24, 0.0 }
 0x867   :  { %1221 = vadd.xlane.f32.xlu0 %v1220_v35 }
 0x87d   :  { %3590 = vrot.lane.b32.xlu0 %v4155_v25, %s3905_s9 }
 0x890   :  { %v4262_v26 = vpop.f32.mrb[8].mxu1 }
 0x891   :  { %v3328_v28 = vpop.f32.mrb[9].mxu1 }
 0x892   :  { %v4264_v29 = vpop.f32.mrb[10].mxu1 }
 0x893   :  { %v3329_v30 = vpop.f32.mrb[11].mxu1 }
 0x8f0   :  { %v1225_v32 = vpop.xlane.xlu0 %1224 }
 0x8f1   :  { %3671 = vrcp.f32 %v1225_v32  ;;  %v4309_v32 = vmul.f32 0.35355338, %v4137_v6 }
 0x8f4   :  { %v1222_v36 = vpop.xlane.xlu0 %1221 }
 0x8f5   :  { %3673 = vrcp.f32 %v1222_v36 }
 0x8f8   :  { %v3591_v38 = vpop.permute.xlu0 %3590 }
 0x8f9   :  { %v3593_v39 = vunpack.i.h.bf16 %v3591_v38  ;;  %v3592_v40 = vunpack.i.l.bf16 %v3591_v38 }
 0x8fb   :  { %v3500_v41 = vpack.c.bf16 %v3593_v39, %v3592_v40  ;;  %v3672_v43 = vpop.eup %3671 }
 0x8fc   :  { %v1229_v46 = vmul.f32 %v3672_v43, %v3668_v23 }
 0x8fd   :  { %3502 = vmatprep.subr.msk.bf16.mxu1 %vm4145_vm2, %v3500_v41 }
 0x8ff   :  { %v3674_v45 = vpop.eup %3673 }
 0x900   :  { %v1227_v25 = vmul.f32 %v3674_v45, %v3670_v24 }
 0x902   :  { %3341 = vmatprep.mubr.msk.f32.mxu1 %vm707_vm3, %v1227_v25 }
 0x903   :  { %3342 = vmatmul.mubr.msk.f32.vlgmr.msra.gmra.mrb[12].mxu1 %vm707_vm3, %v1229_v46 }
 0x904   :  { %3505 = vmatpush3.bf16.xpose.msk.msra.mxu1 %vm4145_vm2, %v3500_v41  ;;  %3354 = vmatprep.mubr.msk.f32.mxu1 %vm619_vm1, %v1370_v47 }
 0x905   :  { %3364 = vmatprep.subr.bf16.mxu1 %v3902_v3 }
 0x90b   :  { %3355 = vmatmul.mubr.msk.f32.vlgmr.msra.gmra.mrb[14].mxu1 %vm619_vm1, %v1372_v50 }
 0x90c   :  { %3365 = vmatpush3.bf16.msra.mxu1 %v1576_v49  ;;  %3366 = vmatprep.mubr.msk.bf16.mxu1 %vm3903_vm5, %v3902_v3 }
 0x90d   :  { %3517 = vmatprep.subr.bf16.mxu1 %v4278_v51 }
 0x9d6   :  { %v3343_v54 = vpop.f32.mrb[12].mxu1 }
 0x9d7   :  { %v1308_v55 = vpop.f32.mrb[13].mxu1 }
 0x9d8   :  { %v1317_v56 = vpack.c.bf16 %v3343_v54, %v1308_v55 }
 0x9da   :  { %3347 = vmatmul.mubr.msk.bf16.vlgmr.msra.gmra.mrb[20].mxu0 %vm619_vm1, %v1317_v56 }
 0x9de   :  { %v3356_v57 = vpop.f32.mrb[14].mxu1 }
 0x9df   :  { %v1457_v58 = vadd.f32 %v3356_v57, %v4175_v37  ;;  %v1451_v59 = vpop.f32.mrb[15].mxu1 }
 0x9e0   :  { %v1452_v60 = vadd.f32 %v4175_v37, %v1451_v59 }
 0x9e1   :  { %v1463_v61 = vsel %vm707_vm3, %v1457_v58, -inf }
 0x9e2   :  { %1464 = vmax.xlane.f32.xlu0 %v1463_v61  ;;  %v1460_v62 = vsel %vm707_vm3, %v1452_v60, -inf }
 0x9e3   :  { %1461 = vmax.xlane.f32.xlu1 %v1460_v62 }
 0x9f4   :  { %3595 = vrot.lane.b32.xlu1 %v4219_v16, %s3905_s9 }
 0x9f8   :  { %3600 = vrot.lane.b32.xlu1 %v4149_v21, %s3901_s7 }
 0x9fc   :  { %2007 = vrot.lane.b32.xlu1 %v4294_v63, %s3901_s7 }
 0xa6f   :  { %v1465_v0 = vpop.xlane.xlu0 %1464 }
 0xa70   :  { %v1467_v37 = vsub.f32 %v1457_v58, %v1465_v0  ;;  %v1462_v1 = vpop.xlane.xlu1 %1461 }
 0xa71   :  { %v1466_v2 = vsub.f32 %v1452_v60, %v1462_v1 }
 0xa72   :  { %v1470_v4 = vmul.f32 1.442695, %v1467_v37 }
 0xa73   :  { %v1468_v5 = vmul.f32 1.442695, %v1466_v2 }
 0xa74   :  { %v3596_v7 = vpop.permute.xlu1 %3595 }
 0xa75   :  { %3675 = vpow2.f32 %v1468_v5  ;;  %v3598_v8 = vunpack.i.h.bf16 %v3596_v7  ;;  %v3597_v9 = vunpack.i.l.bf16 %v3596_v7 }
 0xa76   :  { %3677 = vpow2.f32 %v1470_v4 }
 0xa77   :  { %v3506_v16 = vpack.c.bf16 %v3598_v8, %v3597_v9 }
 0xa78   :  { %v3601_v36 = vpop.permute.xlu1 %3600 }
 0xa79   :  { %3507 = vmatprep.subr.bf16.mxu0 %v3506_v16  ;;  %v3603_v6 = vunpack.i.h.bf16 %v3601_v36  ;;  %v3602_v38 = vunpack.i.l.bf16 %v3601_v36 }
 0xa7a   :  { %3509 = vmatpush3.bf16.msra.mxu0 %v3506_v16  ;;  %v1955_v16 = vld [vmem:[#allocation12] sm:$0xf] }
 0xa7b   :  { %3512 = vmatprep.subr.msk.bf16.mxu0 %vm4145_vm2, %v4151_v22  ;;  %v3520_v43 = vpack.c.bf16 %v3603_v6, %v3602_v38 }
 0xa7c   :  { %v2008_v9 = vpop.permute.xlu1 %2007 }
 0xa7f   :  { %v3676_v13 = vpop.eup %3675 }
 0xa80   :  { %v1472_v10 = vsel %vm707_vm3, %v3676_v13, 0.0  ;;  %v3678_v11 = vpop.eup %3677 }
 0xa81   :  { %1473 = vadd.xlane.f32.xlu0 %v1472_v10  ;;  %v1475_v12 = vsel %vm707_vm3, %v3678_v11, 0.0 }
 0xa85   :  { %1476 = vadd.xlane.f32.xlu0 %v1475_v12 }
 0xaad   :  { %v4303_v14 = vpop.f32.mrb[20].mxu0 }
 0xaae   :  { %v3348_v15 = vpop.f32.mrb[21].mxu0 }
 0xaaf   :  { %v4305_v18 = vpop.f32.mrb[22].mxu0 }
 0xab0   :  { %v3349_v19 = vpop.f32.mrb[23].mxu0 }
 0xb0e   :  { %v1474_v23 = vpop.xlane.xlu0 %1473 }
 0xb0f   :  { %3679 = vrcp.f32 %v1474_v23 }
 0xb12   :  { %v1477_v17 = vpop.xlane.xlu0 %1476 }
 0xb13   :  { %3681 = vrcp.f32 %v1477_v17 }
 0xb19   :  { %v3680_v24 = vpop.eup %3679 }
 0xb1a   :  { %v1479_v35 = vmul.f32 %v3680_v24, %v3676_v13  ;;  %v1960_v13 = vsel %vm816_vm4, %v1955_v16, 0 }
 0xb1c   :  { %3361 = vmatprep.mubr.msk.f32.mxu0 %vm707_vm3, %v1479_v35 }
 0xb1d   :  { %v3682_v28 = vpop.eup %3681 }
 0xb1e   :  { %v1481_v30 = vmul.f32 %v3682_v28, %v3678_v11  ;;  %v4357_v28 = vpack.i.bf16 %v4163_v31, %v4159_v27 }
 0xb20   :  { %3362 = vmatmul.mubr.msk.f32.vlgmr.msra.gmra.mrb[18].mxu0 %vm707_vm3, %v1481_v30 }
 0xb21   :  { %3515 = vmatpush3.bf16.xpose.msk.msra.mxu0 %vm4145_vm2, %v4151_v22  ;;  %3374 = vmatprep.mubr.msk.f32.mxu0 %vm619_vm1, %v4309_v32  ;;  %v4326_v22 = vld [vmem:[#allocation4 + $0x1] ss:$0 sm:$0xff] }
 0xb22   :  { %3384 = vmatprep.subr.bf16.mxu0 %v3902_v3 }
 0xb28   :  { %3375 = vmatmul.mubr.msk.f32.vlgmr.msra.gmra.mrb[24].mxu0 %vm619_vm1, %v4294_v63 }
 0xb29   :  { %3386 = vmatprep.mubr.msk.bf16.mxu0 %vm3903_vm5, %v3902_v3  ;;  %3385 = vmatpush3.bf16.msra.mxu0 %v1960_v13 }
 0xbf3   :  { %v3363_v39 = vpop.f32.mrb[18].mxu0 }
 0xbf4   :  { %v1560_v40 = vpop.f32.mrb[19].mxu0 }
 0xbf5   :  { %v1569_v41 = vpack.c.bf16 %v3363_v39, %v1560_v40 }
 0xbf7   :  { %3367 = vmatmul.mubr.msk.bf16.vlgmr.msra.gmra.mrb[16].mxu1 %vm619_vm1, %v1569_v41 }
 0xbf8   :  { %3519 = vmatpush3.bf16.msra.mxu1 %v4278_v51 }
 0xbf9   :  { %3522 = vmatprep.subr.msk.bf16.mxu1 %vm4145_vm2, %v3520_v43 }
 0xbfb   :  { %v3376_v45 = vpop.f32.mrb[24].mxu0 }
 0xbfc   :  { %v1842_v25 = vpop.f32.mrb[25].mxu0  ;;  %v1848_v47 = vadd.f32 %v3376_v45, %v4326_v22 }
 0xbfd   :  { %v1843_v46 = vadd.f32 %v4326_v22, %v1842_v25 }
 0xbfe   :  { %v1854_v49 = vsel %vm707_vm3, %v1848_v47, -inf }
 0xbff   :  { %v1851_v48 = vsel %vm707_vm3, %v1843_v46, -inf }
 0xc00   :  { %1852 = vmax.xlane.f32.xlu0 %v1851_v48 }
 0xc04   :  { %1855 = vmax.xlane.f32.xlu0 %v1854_v49 }
 0xc8d   :  { %v1853_v50 = vpop.xlane.xlu0 %1852 }
 0xc8e   :  { %v1857_v52 = vsub.f32 %v1843_v46, %v1853_v50 }
 0xc90   :  { %v1859_v51 = vmul.f32 1.442695, %v1857_v52 }
 0xc91   :  { %v1856_v53 = vpop.xlane.xlu0 %1855 }
 0xc92   :  { %3683 = vpow2.f32 %v1859_v51  ;;  %v1858_v54 = vsub.f32 %v1848_v47, %v1856_v53 }
 0xc94   :  { %v1861_v55 = vmul.f32 1.442695, %v1858_v54 }
 0xc96   :  { %3685 = vpow2.f32 %v1861_v55 }
 0xc9c   :  { %v3684_v56 = vpop.eup %3683 }
 0xc9d   :  { %v1863_v57 = vsel %vm707_vm3, %v3684_v56, 0.0 }
 0xc9e   :  { %1864 = vadd.xlane.f32.xlu0 %v1863_v57 }
 0xca0   :  { %v3686_v58 = vpop.eup %3685 }
 0xca1   :  { %v1866_v59 = vsel %vm707_vm3, %v3686_v58, 0.0 }
 0xca2   :  { %1867 = vadd.xlane.f32.xlu0 %v1866_v59 }
 0xcb8   :  { %2005 = vrot.lane.b32.xlu0 %v4309_v32, %s3901_s7 }
 0xcca   :  { %v4336_v60 = vpop.f32.mrb[16].mxu1 }
 0xccb   :  { %v3368_v61 = vpop.f32.mrb[17].mxu1 }
 0xccc   :  { %v4338_v62 = vpop.f32.mrb[18].mxu1 }
 0xccd   :  { %v3369_v0 = vpop.f32.mrb[19].mxu1 }
 0xd2b   :  { %v1865_v37 = vpop.xlane.xlu0 %1864 }
 0xd2c   :  { %3687 = vrcp.f32 %v1865_v37 }
 0xd2f   :  { %v1868_v1 = vpop.xlane.xlu0 %1867 }
 0xd30   :  { %3689 = vrcp.f32 %v1868_v1 }
 0xd33   :  { %v2006_v8 = vpop.permute.xlu0 %2005 }
 0xd36   :  { %v3688_v2 = vpop.eup %3687 }
 0xd37   :  { %v1870_v4 = vmul.f32 %v3688_v2, %v3684_v56 }
 0xd39   :  { %3381 = vmatprep.mubr.msk.f32.mxu1 %vm707_vm3, %v1870_v4 }
 0xd3a   :  { %v3690_v5 = vpop.eup %3689 }
 0xd3b   :  { %v1872_v7 = vmul.f32 %v3690_v5, %v3686_v58  ;;  %v2208_v5 = vld [vmem:[#allocation12 + $0x4] sm:$0xf] }
 0xd3d   :  { %3382 = vmatmul.mubr.msk.f32.vlgmr.msra.gmra.mrb[20].mxu1 %vm707_vm3, %v1872_v7  ;;  %v2213_v7 = vsel %vm816_vm4, %v2208_v5, 0 }
 0xd3e   :  { %3525 = vmatpush3.bf16.xpose.msk.msra.mxu1 %vm4145_vm2, %v3520_v43  ;;  %3394 = vmatprep.mubr.msk.f32.mxu1 %vm619_vm1, %v2006_v8 }
 0xd3f   :  { %3404 = vmatprep.subr.bf16.mxu1 %v3902_v3 }
 0xd45   :  { %3395 = vmatmul.mubr.msk.f32.vlgmr.msra.gmra.mrb[22].mxu1 %vm619_vm1, %v2008_v9 }
 0xd46   :  { %3406 = vmatprep.mubr.msk.bf16.mxu1 %vm3903_vm5, %v3902_v3  ;;  %3405 = vmatpush3.bf16.msra.mxu1 %v2213_v7 }
 0xe10   :  { %v3383_v10 = vpop.f32.mrb[20].mxu1 }
 0xe11   :  { %v1945_v11 = vpop.f32.mrb[21].mxu1 }
 0xe12   :  { %v1954_v12 = vpack.c.bf16 %v3383_v10, %v1945_v11 }
 0xe14   :  { %3387 = vmatmul.mubr.msk.bf16.vlgmr.msra.gmra.mrb[28].mxu0 %vm619_vm1, %v1954_v12 }
 0xe18   :  { %v3396_v15 = vpop.f32.mrb[22].mxu1 }
 0xe19   :  { %v2093_v19 = vadd.f32 %v3396_v15, %v4326_v22  ;;  %v2087_v23 = vpop.f32.mrb[23].mxu1 }
 0xe1a   :  { %v2088_v17 = vadd.f32 %v4326_v22, %v2087_v23 }
 0xe1b   :  { %v2099_v24 = vsel %vm707_vm3, %v2093_v19, -inf }
 0xe1c   :  { %2100 = vmax.xlane.f32.xlu0 %v2099_v24  ;;  %v2096_v35 = vsel %vm707_vm3, %v2088_v17, -inf }
 0xe1d   :  { %2097 = vmax.xlane.f32.xlu1 %v2096_v35 }
 0xe2e   :  { %3605 = vrot.lane.b32.xlu1 %v4357_v28, %s3901_s7 }
 0xe32   :  { %3610 = vrot.lane.b32.xlu0 %v4149_v21, %s3904_s8  ;;  %2258 = vrot.lane.b32.xlu1 %v4309_v32, %s3904_s8 }
 0xea9   :  { %v2101_v30 = vpop.xlane.xlu0 %2100 }
 0xeaa   :  { %v2103_v36 = vsub.f32 %v2093_v19, %v2101_v30  ;;  %v2098_v6 = vpop.xlane.xlu1 %2097 }
 0xeab   :  { %v2102_v38 = vsub.f32 %v2088_v17, %v2098_v6 }
 0xeac   :  { %v2106_v39 = vmul.f32 1.442695, %v2103_v36 }
 0xead   :  { %v2104_v40 = vmul.f32 1.442695, %v2102_v38  ;;  %v3611_v41 = vpop.permute.xlu0 %3610 }
 0xeae   :  { %3691 = vpow2.f32 %v2106_v39  ;;  %v3606_v43 = vpop.permute.xlu1 %3605  ;;  %v3613_v45 = vunpack.i.h.bf16 %v3611_v41  ;;  %v3612_v25 = vunpack.i.l.bf16 %v3611_v41 }
 0xeaf   :  { %v3608_v46 = vunpack.i.h.bf16 %v3606_v43  ;;  %v3607_v47 = vunpack.i.l.bf16 %v3606_v43  ;;  %3693 = vpow2.f32 %v2104_v40 }
 0xeb0   :  { %v3530_v49 = vpack.c.bf16 %v3613_v45, %v3612_v25 }
 0xeb1   :  { %v3526_v48 = vpack.c.bf16 %v3608_v46, %v3607_v47 }
 0xeb2   :  { %v2259_v58 = vpop.permute.xlu1 %2258 }
 0xeb3   :  { %3527 = vmatprep.subr.bf16.mxu0 %v3526_v48 }
 0xeb4   :  { %3529 = vmatpush3.bf16.msra.mxu0 %v3526_v48 }
 0xeb5   :  { %3532 = vmatprep.subr.msk.bf16.mxu0 %vm4145_vm2, %v3530_v49 }
 0xeb8   :  { %v3692_v50 = vpop.eup %3691 }
 0xeb9   :  { %v2111_v52 = vsel %vm707_vm3, %v3692_v50, 0.0  ;;  %v3694_v51 = vpop.eup %3693 }
 0xeba   :  { %2112 = vadd.xlane.f32.xlu1 %v2111_v52  ;;  %v2108_v53 = vsel %vm707_vm3, %v3694_v51, 0.0 }
 0xebe   :  { %2109 = vadd.xlane.f32.xlu1 %v2108_v53 }
 0xecf   :  { %2260 = vrot.lane.b32.xlu1 %v4294_v63, %s3904_s8 }
 0xee7   :  { %v4371_v54 = vpop.f32.mrb[28].mxu0 }
 0xee8   :  { %v3388_v55 = vpop.f32.mrb[29].mxu0 }
 0xee9   :  { %v4373_v56 = vpop.f32.mrb[30].mxu0 }
 0xeea   :  { %v3389_v57 = vpop.f32.mrb[31].mxu0 }
 0xf47   :  { %v2113_v59 = vpop.xlane.xlu1 %2112 }
 0xf48   :  { %3695 = vrcp.f32 %v2113_v59 }
 0xf4b   :  { %v2110_v61 = vpop.xlane.xlu1 %2109 }
 0xf4c   :  { %3697 = vrcp.f32 %v2110_v61 }
 0xf4f   :  { %v2261_v4 = vpop.permute.xlu1 %2260 }
 0xf52   :  { %v3696_v0 = vpop.eup %3695 }
 0xf53   :  { %v2117_v2 = vmul.f32 %v3696_v0, %v3692_v50  ;;  %v2459_v0 = vld [vmem:[#allocation12 + $0x8] sm:$0xf] }
 0xf56   :  { %v3698_v37 = vpop.eup %3697 }
 0xf57   :  { %v2115_v1 = vmul.f32 %v3698_v37, %v3694_v51  ;;  %v2464_v37 = vsel %vm816_vm4, %v2459_v0, 0 }
 0xf59   :  { %3401 = vmatprep.mubr.msk.f32.mxu0 %vm707_vm3, %v2115_v1  ;;  %v3906_v1 = vmov 0  }
 0xf5a   :  { %3402 = vmatmul.mubr.msk.f32.vlgmr.msra.gmra.mrb[26].mxu0 %vm707_vm3, %v2117_v2  ;;  %3630 = vset.pattern.permute.xlu1 %v3906_v1 }
 0xf5b   :  { %3535 = vmatpush3.bf16.xpose.msk.msra.mxu0 %vm4145_vm2, %v3530_v49  ;;  %3414 = vmatprep.mubr.msk.f32.mxu0 %vm619_vm1, %v2259_v58 }
 0xf5c   :  { %3424 = vmatprep.subr.bf16.mxu0 %v3902_v3  ;;  %3629 = vset.pattern.permute.xlu0 %v3906_v1 }
 0xf62   :  { %3415 = vmatmul.mubr.msk.f32.vlgmr.msra.gmra.mrb[32].mxu0 %vm619_vm1, %v2261_v4 }
 0xf63   :  { %3426 = vmatprep.mubr.msk.bf16.mxu0 %vm3903_vm5, %v3902_v3  ;;  %3425 = vmatpush3.bf16.msra.mxu0 %v2464_v37 }
0x102d   :  { %v3403_v8 = vpop.f32.mrb[26].mxu0 }
0x102e   :  { %v2198_v9 = vpop.f32.mrb[27].mxu0 }
0x102f   :  { %v2207_v16 = vpack.c.bf16 %v3403_v8, %v2198_v9 }
0x1031   :  { %3407 = vmatmul.mubr.msk.bf16.vlgmr.msra.gmra.mrb[24].mxu1 %vm619_vm1, %v2207_v16 }
0x1035   :  { %v3416_v13 = vpop.f32.mrb[32].mxu0 }
0x1036   :  { %v2346_v10 = vadd.f32 %v3416_v13, %v4326_v22  ;;  %v2340_v11 = vpop.f32.mrb[33].mxu0  ;;  %v146_v13 = vld [vmem:[%s4744_s29 + $0x8] sm:$0xff] }
0x1037   :  { %v2341_v12 = vadd.f32 %v4326_v22, %v2340_v11 }
0x1038   :  { %v2352_v15 = vsel %vm707_vm3, %v2346_v10, -inf }
0x1039   :  { %2353 = vmax.xlane.f32.xlu0 %v2352_v15  ;;  %v2349_v19 = vsel %vm707_vm3, %v2341_v12, -inf }
0x103a   :  { %2350 = vmax.xlane.f32.xlu1 %v2349_v19 }
0x104b   :  { %3615 = vrot.lane.b32.xlu1 %v4357_v28, %s3904_s8 }
0x104f   :  { %2509 = vrot.lane.b32.xlu1 %v4309_v32, %s3905_s9 }
0x1053   :  { %2511 = vrot.lane.b32.xlu1 %v4294_v63, %s3905_s9 }
0x10c6   :  { %v2354_v23 = vpop.xlane.xlu0 %2353 }
0x10c7   :  { %v2356_v17 = vsub.f32 %v2346_v10, %v2354_v23  ;;  %v2351_v24 = vpop.xlane.xlu1 %2350  ;;  %v147_v10 = vld [vmem:[%s4744_s29 + $0x10] sm:$0xff] }
0x10c8   :  { %v2355_v35 = vsub.f32 %v2341_v12, %v2351_v24 }
0x10c9   :  { %v2359_v30 = vmul.f32 1.442695, %v2356_v17 }
0x10ca   :  { %v2357_v36 = vmul.f32 1.442695, %v2355_v35 }
0x10cb   :  { %3699 = vpow2.f32 %v2359_v30  ;;  %v3616_v6 = vpop.permute.xlu1 %3615 }
0x10cc   :  { %v3618_v38 = vunpack.i.h.bf16 %v3616_v6  ;;  %v3617_v39 = vunpack.i.l.bf16 %v3616_v6  ;;  %3701 = vpow2.f32 %v2357_v36 }
0x10ce   :  { %v3536_v40 = vpack.c.bf16 %v3618_v38, %v3617_v39 }
0x10cf   :  { %v2510_v59 = vpop.permute.xlu1 %2509 }
0x10d0   :  { %3537 = vmatprep.subr.bf16.mxu1 %v3536_v40 }
0x10d1   :  { %3539 = vmatpush3.bf16.msra.mxu1 %v3536_v40 }
0x10d3   :  { %v2512_v61 = vpop.permute.xlu1 %2511 }
0x10d5   :  { %v3700_v41 = vpop.eup %3699 }
0x10d6   :  { %v2364_v32 = vsel %vm707_vm3, %v3700_v41, 0.0  ;;  %v3702_v43 = vpop.eup %3701 }
0x10d7   :  { %2365 = vadd.xlane.f32.xlu0 %v2364_v32  ;;  %v2361_v63 = vsel %vm707_vm3, %v3702_v43, 0.0  ;;  %v145_v32 = vld [vmem:[%s4744_s29] sm:$0xff] }
0x10db   :  { %2362 = vadd.xlane.f32.xlu0 %v2361_v63 }
0x10f1   :  { %3620 = vrot.lane.b32.xlu0 %v4149_v21, %s3905_s9 }
0x1104   :  { %v4400_v45 = vpop.f32.mrb[24].mxu1 }
0x1105   :  { %v3408_v25 = vpop.f32.mrb[25].mxu1 }
0x1106   :  { %v4402_v46 = vpop.f32.mrb[26].mxu1 }
0x1107   :  { %v3409_v47 = vpop.f32.mrb[27].mxu1 }
0x1164   :  { %v2366_v48 = vpop.xlane.xlu0 %2365 }
0x1165   :  { %3703 = vrcp.f32 %v2366_v48 }
0x1168   :  { %v2363_v49 = vpop.xlane.xlu0 %2362 }
0x1169   :  { %3705 = vrcp.f32 %v2363_v49 }
0x116c   :  { %v3621_v50 = vpop.permute.xlu0 %3620 }
0x116d   :  { %v3623_v52 = vunpack.i.h.bf16 %v3621_v50  ;;  %v3622_v51 = vunpack.i.l.bf16 %v3621_v50 }
0x116f   :  { %v3540_v53 = vpack.c.bf16 %v3623_v52, %v3622_v51  ;;  %v3704_v55 = vpop.eup %3703 }
0x1170   :  { %v2370_v58 = vmul.f32 %v3704_v55, %v3700_v41 }
0x1171   :  { %3542 = vmatprep.subr.msk.bf16.mxu1 %vm4145_vm2, %v3540_v53 }
0x1173   :  { %v3706_v57 = vpop.eup %3705 }
0x1174   :  { %v2368_v21 = vmul.f32 %v3706_v57, %v3702_v43 }
0x1176   :  { %3421 = vmatprep.mubr.msk.f32.mxu1 %vm707_vm3, %v2368_v21  ;;  %v4458_v21 = vld [vmem:[%s4715_s11] ss:$0 sm:$0xff] }
0x1177   :  { %3422 = vmatmul.mubr.msk.f32.vlgmr.msra.gmra.mrb[28].mxu1 %vm707_vm3, %v2370_v58 }
0x1178   :  { %3545 = vmatpush3.bf16.xpose.msk.msra.mxu1 %vm4145_vm2, %v3540_v53  ;;  %3434 = vmatprep.mubr.msk.f32.mxu1 %vm619_vm1, %v2510_v59  ;;  %v4470_v59 = vld [vmem:[%s4715_s11 + $0x2] ss:$0 sm:$0xff] }
0x1179   :  { %3444 = vmatprep.subr.bf16.mxu1 %v3902_v3 }
0x117f   :  { %3435 = vmatmul.mubr.msk.f32.vlgmr.msra.gmra.mrb[30].mxu1 %vm619_vm1, %v2512_v61 }
0x1180   :  { %3446 = vmatprep.mubr.msk.bf16.mxu1 %vm3903_vm5, %v3902_v3 }
0x124a   :  { %v3423_v2 = vpop.f32.mrb[28].mxu1 }
0x124b   :  { %v2449_v20 = vpop.f32.mrb[29].mxu1 }
0x124c   :  { %v2458_v4 = vpack.c.bf16 %v3423_v2, %v2449_v20 }
0x124e   :  { %3427 = vmatmul.mubr.msk.bf16.vlgmr.msra.gmra.mrb[36].mxu0 %vm619_vm1, %v2458_v4 }
0x1252   :  { %v3436_v5 = vpop.f32.mrb[30].mxu1 }
0x1253   :  { %v2597_v7 = vadd.f32 %v3436_v5, %v4326_v22  ;;  %v2591_v8 = vpop.f32.mrb[31].mxu1 }
0x1254   :  { %v2592_v9 = vadd.f32 %v4326_v22, %v2591_v8  ;;  %v148_v22 = vld [vmem:[%s4744_s29 + $0x18] sm:$0xff] }
0x1255   :  { %v2603_v3 = vsel %vm707_vm3, %v2597_v7, -inf }
0x1256   :  { %2604 = vmax.xlane.f32.xlu0 %v2603_v3  ;;  %v2600_v16 = vsel %vm707_vm3, %v2592_v9, -inf }
0x1257   :  { %2601 = vmax.xlane.f32.xlu1 %v2600_v16 }
0x1268   :  { %3625 = vrot.lane.b32.xlu1 %v4357_v28, %s3905_s9 }
0x126c   :  { %460 = vperm.xlu1 %3630, %v146_v13  }
0x1270   :  { %465 = vperm.xlu1 %3630, %v147_v10  }
0x1274   :  { %470 = vperm.xlu1 %3630, %v148_v22  }
0x12e3   :  { %v2605_v11 = vpop.xlane.xlu0 %2604 }
0x12e4   :  { %v2607_v12 = vsub.f32 %v2597_v7, %v2605_v11  ;;  %v2602_v15 = vpop.xlane.xlu1 %2601 }
0x12e5   :  { %v2606_v19 = vsub.f32 %v2592_v9, %v2602_v15 }
0x12e6   :  { %v2610_v28 = vmul.f32 1.442695, %v2607_v12 }
0x12e7   :  { %v2608_v23 = vmul.f32 1.442695, %v2606_v19 }
0x12e8   :  { %v3626_v17 = vpop.permute.xlu1 %3625 }
0x12e9   :  { %3707 = vpow2.f32 %v2608_v23  ;;  %v3628_v24 = vunpack.i.h.bf16 %v3626_v17  ;;  %v3627_v35 = vunpack.i.l.bf16 %v3626_v17 }
0x12ea   :  { %3709 = vpow2.f32 %v2610_v28 }
0x12eb   :  { %v3546_v30 = vpack.c.bf16 %v3628_v24, %v3627_v35 }
0x12ec   :  { %v4432_v36 = vpop.permute.xlu1 %460 }
0x12ed   :  { %v474_v6 = vmul.f32 %v4432_v36, %v4167_v34  ;;  %3547 = vmatprep.subr.bf16.mxu0 %v3546_v30 }
0x12ee   :  { %3549 = vmatpush3.bf16.msra.mxu0 %v3546_v30 }
0x12ef   :  { %483 = vst.msk [vmem:[#allocation2 + $0x10] sm:$0xff] %vm151_vm0, %v474_v6 }
0x12f0   :  { %v4451_v55 = vpop.permute.xlu1 %465 }
0x12f1   :  { %v475_v7 = vmul.f32 %v4451_v55, %v4159_v27 }
0x12f3   :  { %v3708_v38 = vpop.eup %3707 }
0x12f4   :  { %v2612_v39 = vsel %vm707_vm3, %v3708_v38, 0.0  ;;  %v3710_v40 = vpop.eup %3709  ;;  %v4460_v58 = vpop.permute.xlu1 %470 }
0x12f5   :  { %2613 = vadd.xlane.f32.xlu0 %v2612_v39  ;;  %v2615_v41 = vsel %vm707_vm3, %v3710_v40, 0.0  ;;  %v476_v8 = vmul.f32 %v4460_v58, %v4163_v31  ;;  %v4493_v31 = vld [vmem:[%s4715_s11 + $0x3] ss:$0 sm:$0xff] }
0x12f6   :  { %v540_v13 = vld [vmem:[#allocation2 + $0x10] sm:$0xff] }
0x12f7   :  { %v551_v10 = vld [vmem:[#allocation2 + $0x11] sm:$0xff] }
0x12f8   :  { %v562_v22 = vld [vmem:[#allocation2 + $0x12] sm:$0xff] }
0x12f9   :  { %2616 = vadd.xlane.f32.xlu0 %v2615_v41  ;;  %v572_v11 = vld [vmem:[#allocation2 + $0x13] sm:$0xff]  ;;  %v4505_v41 = vld [vmem:[%s4715_s11 + $0x4] ss:$0 sm:$0xff] }
0x12fa   :  { %v4485_v12 = vld [vmem:[#allocation2 + $0x14] sm:$0xff] }
0x12fb   :  { %v4495_v30 = vld [vmem:[#allocation2 + $0x15] sm:$0xff] }
0x130f   :  { %455 = vperm.xlu0 %3629, %v145_v32  }
0x1321   :  { %v4442_v43 = vpop.f32.mrb[36].mxu0 }
0x1322   :  { %v3428_v34 = vpop.f32.mrb[37].mxu0 }
0x1323   :  { %v4444_v63 = vpop.f32.mrb[38].mxu0 }
0x1324   :  { %v3429_v25 = vpop.f32.mrb[39].mxu0 }
0x1382   :  { %v2614_v47 = vpop.xlane.xlu0 %2613 }
0x1383   :  { %3711 = vrcp.f32 %v2614_v47 }
0x1386   :  { %v2617_v48 = vpop.xlane.xlu0 %2616 }
0x1387   :  { %3713 = vrcp.f32 %v2617_v48  ;;  %v4512_v48 = vld [vmem:[%s4715_s11 + $0x5] ss:$0 sm:$0xff] }
0x138d   :  { %v3712_v49 = vpop.eup %3711 }
0x138e   :  { %v4446_v50 = vpop.permute.xlu0 %455  ;;  %v2619_v52 = vmul.f32 %v3712_v49, %v3708_v38  ;;  %v4517_v49 = vld [vmem:[%s4715_s11 + $0x6] ss:$0 sm:$0xff] }
0x138f   :  { %v473_v51 = vmul.f32 %v4446_v50, %v4165_v33  ;;  %v4465_v33 = vld [vmem:[%s4715_s11 + $0x1] ss:$0 sm:$0xff] }
0x1390   :  { %3441 = vmatprep.mubr.msk.f32.mxu0 %vm707_vm3, %v2619_v52 }
0x1391   :  { %v3714_v53 = vpop.eup %3713  ;;  %482 = vst.msk [vmem:[#allocation2 + $0x8] sm:$0xff] %vm151_vm0, %v473_v51 }
0x1392   :  { %v2621_v57 = vmul.f32 %v3714_v53, %v3710_v40 }
0x1394   :  { %3442 = vmatmul.mubr.msk.f32.vlgmr.msra.gmra.mrb[34].mxu0 %vm707_vm3, %v2621_v57 }
0x1398   :  { %v484_v61 = vld [vmem:[#allocation2 + $0x3] sm:$0xff]  ;;  %v4472_v0 = vld [vmem:[#allocation2 + $0xb] sm:$0xff] }
0x1399   :  { %v495_v37 = vld [vmem:[#allocation2 + $0x4] sm:$0xff]  ;;  %v491_v1 = vmul.f32 %v4458_v21, %v484_v61  ;;  %v492_v2 = vmul.f32 %v4458_v21, %v4472_v0  ;;  %v4477_v20 = vld [vmem:[#allocation2 + $0xc] sm:$0xff] }
0x139a   :  { %v506_v4 = vld [vmem:[#allocation2 + $0x5] sm:$0xff]  ;;  %v4479_v5 = vld [vmem:[#allocation2 + $0xd] sm:$0xff]  ;;  %v502_v28 = vmul.f32 %v4465_v33, %v495_v37  ;;  %v503_v23 = vmul.f32 %v4465_v33, %v4477_v20 }
0x139b   :  { %v517_v9 = vld [vmem:[#allocation2 + $0x6] sm:$0xff]  ;;  %v518_v3 = vld [vmem:[#allocation2 + $0xe] sm:$0xff]  ;;  %v493_v15 = vadd.f32 %v491_v1, %v473_v51  ;;  %v494_v19 = vadd.f32 %v492_v2, %v474_v6  ;;  %v513_v6 = vmul.f32 %v4470_v59, %v506_v4  ;;  %v514_v40 = vmul.f32 %v4470_v59, %v4479_v5 }
0x139c   :  { %v528_v16 = vld [vmem:[#allocation2 + $0x7] sm:$0xff]  ;;  %v529_v27 = vld [vmem:[#allocation2 + $0xf] sm:$0xff]  ;;  %v524_v25 = vmul.f32 %v4493_v31, %v517_v9  ;;  %v525_v47 = vmul.f32 %v4493_v31, %v518_v3  ;;  %v547_v9 = vmul.f32 %v4512_v48, %v540_v13 }
0x139d   :  { %v539_v17 = vld [vmem:[#allocation2 + $0x8] sm:$0xff]  ;;  %v504_v38 = vadd.f32 %v502_v28, %v493_v15  ;;  %v505_v39 = vadd.f32 %v503_v23, %v494_v19  ;;  %v535_v53 = vmul.f32 %v4505_v41, %v528_v16  ;;  %v536_v57 = vmul.f32 %v4505_v41, %v529_v27  ;;  %v4524_v61 = vld [vmem:[%s4715_s11 + $0x7] ss:$0 sm:$0xff] }
0x139e   :  { %v550_v24 = vld [vmem:[#allocation2 + $0x9] sm:$0xff]  ;;  %v4529_v37 = vld [vmem:[%s4715_s11 + $0x8] ss:$0 sm:$0xff]  ;;  %v546_v4 = vmul.f32 %v4512_v48, %v539_v17  ;;  %v558_v16 = vmul.f32 %v4517_v49, %v551_v10  ;;  %v569_v10 = vmul.f32 %v4524_v61, %v562_v22 }
0x139f   :  { %v561_v35 = vld [vmem:[#allocation2 + $0xa] sm:$0xff]  ;;  %v515_v32 = vadd.f32 %v513_v6, %v504_v38  ;;  %v516_v34 = vadd.f32 %v514_v40, %v505_v39  ;;  %v557_v3 = vmul.f32 %v4517_v49, %v550_v24  ;;  %v579_v22 = vmul.f32 %v4529_v37, %v572_v11 }
0x13a0   :  { %1627 = vst.msk [vmem:[#allocation2 + $0x8] sm:$0xff] %vm151_vm0, %v475_v7  ;;  %1628 = vst.msk [vmem:[#allocation2 + $0x10] sm:$0xff] %vm151_vm0, %v476_v8  ;;  %v568_v13 = vmul.f32 %v4524_v61, %v561_v35  ;;  %v578_v35 = vmul.f32 %v4529_v37, %v4472_v0 }
0x13a1   :  { %v526_v52 = vadd.f32 %v524_v25, %v515_v32  ;;  %v527_v51 = vadd.f32 %v525_v47, %v516_v34  ;;  %v4552_v34 = vld [vmem:[%s4715_s11 + $0x9] ss:$0 sm:$0xff] }
0x13a2   :  { %v588_v0 = vmul.f32 %v4552_v34, %v4477_v20  ;;  %v589_v11 = vmul.f32 %v4552_v34, %v4485_v12 }
0x13a3   :  { %v537_v1 = vadd.f32 %v535_v53, %v526_v52  ;;  %v538_v2 = vadd.f32 %v536_v57, %v527_v51 }
0x13a5   :  { %v548_v23 = vadd.f32 %v546_v4, %v537_v1  ;;  %v549_v27 = vadd.f32 %v547_v9, %v538_v2  ;;  %v4563_v1 = vld [vmem:[%s4715_s11 + $0xa] ss:$0 sm:$0xff]  ;;  %s3859_s11 = scalar_lea.vmem %s3037_s10, 512 }
0x13a6   :  { %p3860_p6 = scmp.ne.s32.totalorder %s3037_s10, %s3859_s11  ;;  %p3865_p8 = scmp.lt.s32.totalorder %s3859_s11, %s3859_s11 }
0x13a7   :  { %v1629_v15 = vld [vmem:[#allocation2 + $0x3] sm:$0xff]  ;;  %v4535_v19 = vld [vmem:[#allocation2 + $0xb] sm:$0xff]  ;;  %v560_v25 = vadd.f32 %v558_v16, %v549_v27 }
0x13a8   :  { %v1640_v28 = vld [vmem:[#allocation2 + $0x4] sm:$0xff]  ;;  %v1636_v38 = vmul.f32 %v4458_v21, %v1629_v15  ;;  %v1637_v39 = vmul.f32 %v4458_v21, %v4535_v19  ;;  %v4540_v6 = vld [vmem:[#allocation2 + $0xc] sm:$0xff]  ;;  %v559_v21 = vadd.f32 %v557_v3, %v548_v23  ;;  %p3866_p9 = por %p3865_p8, %p3864_p7 }
0x13a9   :  { %v1651_v17 = vld [vmem:[#allocation2 + $0x5] sm:$0xff]  ;;  %v4542_v40 = vld [vmem:[#allocation2 + $0xd] sm:$0xff]  ;;  %v1647_v24 = vmul.f32 %v4465_v33, %v1640_v28  ;;  %v1648_v32 = vmul.f32 %v4465_v33, %v4540_v6 }
0x13aa   :  { %v1638_v47 = vadd.f32 %v1636_v38, %v475_v7  ;;  %v1639_v52 = vadd.f32 %v1637_v39, %v476_v8  ;;  %v1662_v51 = vld [vmem:[#allocation2 + $0x6] sm:$0xff]  ;;  %v1663_v53 = vld [vmem:[#allocation2 + $0xe] sm:$0xff]  ;;  %v1658_v57 = vmul.f32 %v4470_v59, %v1651_v17  ;;  %v1659_v33 = vmul.f32 %v4470_v59, %v4542_v40  ;;  %p3867_p10 = pnand %p3866_p9, %p3860_p6 }
0x13ab   :  { %v570_v2 = vadd.f32 %v568_v13, %v559_v21  ;;  %v571_v7 = vadd.f32 %v569_v10, %v560_v25  ;;  %v1673_v9 = vld [vmem:[#allocation2 + $0x7] sm:$0xff]  ;;  %v1674_v3 = vld [vmem:[#allocation2 + $0xf] sm:$0xff]  ;;  %v1669_v16 = vmul.f32 %v4493_v31, %v1662_v51  ;;  %v1670_v59 = vmul.f32 %v4493_v31, %v1663_v53 }
0x13ac   :  { %v1649_v8 = vadd.f32 %v1647_v24, %v1638_v47  ;;  %v1650_v4 = vadd.f32 %v1648_v32, %v1639_v52  ;;  %v1684_v38 = vld [vmem:[#allocation2 + $0x8] sm:$0xff]  ;;  %v1685_v39 = vld [vmem:[#allocation2 + $0x10] sm:$0xff]  ;;  %v598_v17 = vmul.f32 %v4563_v1, %v4479_v5  ;;  %v599_v13 = vmul.f32 %v4563_v1, %v4495_v30 }
0x13ad   :  { %v580_v15 = vadd.f32 %v578_v35, %v570_v2  ;;  %v581_v28 = vadd.f32 %v579_v22, %v571_v7  ;;  %v1680_v20 = vmul.f32 %v4505_v41, %v1673_v9  ;;  %v1681_v12 = vmul.f32 %v4505_v41, %v1674_v3  ;;  %v1695_v21 = vld [vmem:[#allocation2 + $0x9] sm:$0xff]  ;;  %v1696_v25 = vld [vmem:[#allocation2 + $0x11] sm:$0xff] }
0x13ae   :  { %v1660_v23 = vadd.f32 %v1658_v57, %v1649_v8  ;;  %v1661_v27 = vadd.f32 %v1659_v33, %v1650_v4  ;;  %v1691_v47 = vmul.f32 %v4512_v48, %v1684_v38  ;;  %v1692_v52 = vmul.f32 %v4512_v48, %v1685_v39  ;;  %v1706_v22 = vld [vmem:[#allocation2 + $0xa] sm:$0xff]  ;;  %v1707_v30 = vld [vmem:[#allocation2 + $0x12] sm:$0xff] }
0x13af   :  { %v590_v10 = vadd.f32 %v588_v0, %v580_v15  ;;  %v591_v24 = vadd.f32 %v589_v11, %v581_v28  ;;  %v3079_v57 = vld [vmem:[#allocation13] ss:$0 sm:$0xff]  ;;  %v1702_v33 = vmul.f32 %v4517_v49, %v1695_v21  ;;  %v1703_v41 = vmul.f32 %v4517_v49, %v1696_v25 }
0x13b0   :  { %v1671_v32 = vadd.f32 %v1669_v16, %v1660_v23  ;;  %v1672_v31 = vadd.f32 %v1670_v59, %v1661_v27  ;;  %v1717_v9 = vld [vmem:[#allocation2 + $0x13] sm:$0xff]  ;;  %v1713_v48 = vmul.f32 %v4524_v61, %v1706_v22  ;;  %v1714_v3 = vmul.f32 %v4524_v61, %v1707_v30 }
0x13b1   :  { %v600_v51 = vadd.f32 %v598_v17, %v590_v10  ;;  %v601_v53 = vadd.f32 %v599_v13, %v591_v24  ;;  %v1727_v15 = vld [vmem:[#allocation2 + $0x14] sm:$0xff]  ;;  %v1723_v28 = vmul.f32 %v4529_v37, %v4535_v19  ;;  %v1724_v49 = vmul.f32 %v4529_v37, %v1717_v9 }
0x13b2   :  { %v1682_v5 = vadd.f32 %v1680_v20, %v1671_v32  ;;  %v1683_v35 = vadd.f32 %v1681_v12, %v1672_v31  ;;  %v1737_v38 = vld [vmem:[#allocation2 + $0x15] sm:$0xff]  ;;  %v1733_v61 = vmul.f32 %v4552_v34, %v4540_v6  ;;  %v1734_v39 = vmul.f32 %v4552_v34, %v1727_v15 }
0x13b3   :  { %v602_v2 = vmul.f32 %v600_v51, %v4446_v50  ;;  %v603_v7 = vmul.f32 %v601_v53, %v4432_v36  ;;  %v1743_v37 = vmul.f32 %v4563_v1, %v4542_v40  ;;  %v3724_v40 = vld [vmem:[%s4741_s0 + $0x8] sm:$0xff] }
0x13b4   :  { %v1693_v8 = vadd.f32 %v1691_v47, %v1682_v5  ;;  %v1694_v4 = vadd.f32 %v1692_v52, %v1683_v35 }
0x13b5   :  { %v611_v0 = vadd.f32 %v3079_v57, %v602_v2  ;;  %v612_v11 = vadd.f32 %v3079_v57, %v603_v7 }
0x13b6   :  { %v1704_v16 = vadd.f32 %v1702_v33, %v1693_v8  ;;  %v1705_v59 = vadd.f32 %v1703_v41, %v1694_v4  ;;  %v3725_v33 = vld [vmem:[%s4741_s0 + $0x10] sm:$0xff]  ;;  %v3726_v8 = vld [vmem:[%s4741_s0 + $0x18] sm:$0xff] }
0x13b7   :  { %v861_v50 = vadd.f32 %v4231_v42, %v611_v0  ;;  %v862_v36 = vadd.f32 %v4233_v44, %v612_v11  ;;  %v1744_v42 = vmul.f32 %v4563_v1, %v1737_v38 }
0x13b8   :  { %v1715_v23 = vadd.f32 %v1713_v48, %v1704_v16  ;;  %v1716_v27 = vadd.f32 %v1714_v3, %v1705_v59 }
0x13b9   :  { %v1115_v17 = vadd.f32 %v4262_v26, %v861_v50  ;;  %v1116_v13 = vadd.f32 %v4264_v29, %v862_v36  ;;  %v3723_v29 = vld [vmem:[%s4741_s0] sm:$0xff] }
0x13ba   :  { %v1725_v20 = vadd.f32 %v1723_v28, %v1715_v23  ;;  %v1726_v19 = vadd.f32 %v1724_v49, %v1716_v27 }
0x13bb   :  { %v1367_v44 = vadd.f32 %v4303_v14, %v1115_v17  ;;  %v1368_v12 = vadd.f32 %v4305_v18, %v1116_v13 }
0x13bc   :  { %v1735_v10 = vadd.f32 %v1733_v61, %v1725_v20  ;;  %v1736_v24 = vadd.f32 %v1734_v39, %v1726_v19 }
0x13bd   :  { %v1619_v6 = vadd.f32 %v4336_v60, %v1367_v44  ;;  %v1620_v34 = vadd.f32 %v4338_v62, %v1368_v12 }
0x13be   :  { %v1745_v26 = vadd.f32 %v1743_v37, %v1735_v10  ;;  %v1746_v32 = vadd.f32 %v1744_v42, %v1736_v24 }
0x13bf   :  { %v1621_v31 = vadd.f32 %v3723_v29, %v1619_v6  ;;  %v1622_v14 = vadd.f32 %v3724_v40, %v1620_v34 }
0x13c0   :  { %v1747_v18 = vmul.f32 %v1745_v26, %v4451_v55  ;;  %v1748_v1 = vmul.f32 %v1746_v32, %v4460_v58 }
0x13c1   :  { %1623 = vst.msk [vmem:[#allocation3] sm:$0xff] %vm151_vm0, %v1621_v31  ;;  %1624 = vst.msk [vmem:[#allocation3 + $0x8] sm:$0xff] %vm151_vm0, %v1622_v14  ;;  %v3150_v31 = vld [vmem:[%s4718_s14] ss:$0 sm:$0xff] }
0x13c2   :  { %v1756_v60 = vadd.f32 %v3079_v57, %v1747_v18  ;;  %v1757_v62 = vadd.f32 %v3079_v57, %v1748_v1  ;;  %v3151_v1 = vld [vmem:[%s4719_s15] ss:$0 sm:$0xff] }
0x13c4   :  { %v2003_v21 = vadd.f32 %v4371_v54, %v1756_v60  ;;  %v2004_v25 = vadd.f32 %v4373_v56, %v1757_v62  ;;  %v2710_v56 = vld [vmem:[#allocation12 + $0xc] sm:$0xf] }
0x13c6   :  { %v2256_v47 = vadd.f32 %v4400_v45, %v2003_v21  ;;  %v2257_v52 = vadd.f32 %v4402_v46, %v2004_v25  ;;  %v2715_v45 = vsel %vm816_vm4, %v2710_v56, 0 }
0x13c7   :  { %3445 = vmatpush3.bf16.msra.mxu1 %v2715_v45 }
0x13c8   :  { %v2507_v51 = vadd.f32 %v4442_v43, %v2256_v47  ;;  %v2508_v55 = vadd.f32 %v4444_v63, %v2257_v52  ;;  %v4618_v53 = vld [vmem:[#allocation3] sm:$0xff]  ;;  %v4620_v58 = vld [vmem:[#allocation3 + $0x8] sm:$0xff] }
0x13c9   :  { %v2770_v5 = vsel %vm151_vm0, %v4618_v53, 0.0  ;;  %v2773_v54 = vsel %vm151_vm0, %v4620_v58, 0.0  ;;  %v3637_v47 = vld [vmem:[%s4720_s16] sm:$0xff]   ;;  %v3638_v52 = vld [vmem:[%s4720_s16 + $0x8] sm:$0xff]  }
0x13ca   :  { %2771 = vadd.xlane.f32.xlu1 %v2770_v5  ;;  %2774 = vadd.xlane.f32.xlu0 %v2773_v54 }
0x13cb   :  { %3450 = vmatprep.subr.bf16.mxu0 %v3637_v47 }
0x13cc   :  { %3451 = vmatpush3.bf16.msra.mxu0 %v3637_v47 }
0x13cd   :  { %3452 = vmatprep.subr.bf16.mxu0 %v3638_v52 }
0x13d0   :  { %3453 = vmatpush3.bf16.msra.mxu0 %v3638_v52 }
0x1457   :  { %v2772_v9 = vpop.xlane.xlu1 %2771  ;;  %v2775_v3 = vpop.xlane.xlu0 %2774 }
0x1458   :  { %v2782_v48 = vmul.f32 0.03125, %v2772_v9  ;;  %v2783_v11 = vmul.f32 0.03125, %v2775_v3  ;;  %v3152_v9 = vld [vmem:[%s4721_s17] ss:$0 sm:$0xff]  ;;  %s4745_s17 = sld [smem:[#allocation26_spill]] }
0x145a   :  { %v2786_v16 = vsub.f32 %v4618_v53, %v2782_v48  ;;  %v2787_v28 = vsub.f32 %v4620_v58, %v2783_v11 }
0x145c   :  { %v2790_v50 = vmul.f32 %v2786_v16, %v2786_v16  ;;  %v2791_v23 = vmul.f32 %v2787_v28, %v2787_v28 }
0x145e   :  { %v2794_v36 = vsel %vm151_vm0, %v2790_v50, 0.0  ;;  %v2797_v27 = vsel %vm151_vm0, %v2791_v23, 0.0 }
0x1467   :  { %v3443_v46 = vpop.f32.mrb[34].mxu0 }
0x1468   :  { %v2700_v43 = vpop.f32.mrb[35].mxu0 }
0x1469   :  { %v2709_v35 = vpack.c.bf16 %v3443_v46, %v2700_v43 }
0x146b   :  { %3447 = vmatmul.mubr.msk.bf16.vlgmr.msra.gmra.mrb[32].mxu1 %vm619_vm1, %v2709_v35 }
0x153e   :  { %v2751_v63 = vpop.f32.mrb[32].mxu1 }
0x153f   :  { %v2758_v22 = vadd.f32 %v2751_v63, %v2507_v51  ;;  %v3448_v30 = vpop.f32.mrb[33].mxu1  ;;  %v3639_v51 = vld [vmem:[%s4722_s18] sm:$0xff]  }
0x1540   :  { %v2754_v57 = vpop.f32.mrb[34].mxu1  ;;  %3458 = vmatprep.subr.bf16.mxu1 %v3639_v51 }
0x1541   :  { %v2760_v41 = vadd.f32 %v3725_v33, %v2758_v22  ;;  %v2759_v2 = vadd.f32 %v2754_v57, %v2508_v55  ;;  %v3449_v7 = vpop.f32.mrb[35].mxu1  ;;  %v3640_v55 = vld [vmem:[%s4722_s18 + $0x8] sm:$0xff]   ;;  %3459 = vmatpush3.bf16.msra.mxu1 %v3639_v51 }
0x1542   :  { %3460 = vmatprep.subr.bf16.mxu1 %v3640_v55 }
0x1543   :  { %2762 = vst.msk [vmem:[#allocation3 + $0x10] sm:$0xff] %vm151_vm0, %v2760_v41  ;;  %v2761_v4 = vadd.f32 %v3726_v8, %v2759_v2  ;;  %v3641_v8 = vld [vmem:[%s4722_s18 + $0x10] sm:$0xff]  }
0x1545   :  { %2763 = vst.msk [vmem:[#allocation3 + $0x18] sm:$0xff] %vm151_vm0, %v2761_v4  ;;  %3461 = vmatpush3.bf16.msra.mxu1 %v3640_v55  ;;  %v3642_v4 = vld [vmem:[%s4722_s18 + $0x18] sm:$0xff]  }
0x1546   :  { %3462 = vmatprep.subr.bf16.mxu1 %v3641_v8 }
0x1549   :  { %3463 = vmatpush3.bf16.msra.mxu1 %v3641_v8 }
0x154a   :  { %v4636_v0 = vld [vmem:[#allocation3 + $0x10] sm:$0xff]  ;;  %3464 = vmatprep.subr.bf16.mxu1 %v3642_v4 }
0x154b   :  { %v2776_v59 = vsel %vm151_vm0, %v4636_v0, 0.0 }
0x154c   :  { %2777 = vadd.xlane.f32.xlu1 %v2776_v59  ;;  %v4641_v15 = vld [vmem:[#allocation3 + $0x18] sm:$0xff] }
0x154d   :  { %v2779_v49 = vsel %vm151_vm0, %v4641_v15, 0.0  ;;  %3465 = vmatpush3.bf16.msra.mxu1 %v3642_v4 }
0x1550   :  { %2780 = vadd.xlane.f32.xlu1 %v2779_v49 }
0x1554   :  { %2795 = vadd.xlane.f32.xlu1 %v2794_v36 }
0x1558   :  { %2798 = vadd.xlane.f32.xlu1 %v2797_v27 }
0x15d9   :  { %v2778_v38 = vpop.xlane.xlu1 %2777 }
0x15da   :  { %v2784_v61 = vmul.f32 0.03125, %v2778_v38 }
0x15dc   :  { %v2788_v39 = vsub.f32 %v4636_v0, %v2784_v61 }
0x15dd   :  { %v2781_v17 = vpop.xlane.xlu1 %2780 }
0x15de   :  { %v2785_v13 = vmul.f32 0.03125, %v2781_v17  ;;  %v2792_v20 = vmul.f32 %v2788_v39, %v2788_v39  ;;  %v3157_v17 = vld [vmem:[%s4745_s17] ss:$0 sm:$0xff] }
0x15e0   :  { %v2789_v19 = vsub.f32 %v4641_v15, %v2785_v13  ;;  %v2800_v37 = vsel %vm151_vm0, %v2792_v20, 0.0 }
0x15e1   :  { %2801 = vadd.xlane.f32.xlu0 %v2800_v37  ;;  %v2796_v42 = vpop.xlane.xlu1 %2795 }
0x15e2   :  { %v2806_v44 = vmul.f32 0.03125, %v2796_v42  ;;  %v2793_v12 = vmul.f32 %v2789_v19, %v2789_v19 }
0x15e4   :  { %v2810_v10 = vadd.f32 1e-05, %v2806_v44  ;;  %v2803_v24 = vsel %vm151_vm0, %v2793_v12, 0.0 }
0x15e5   :  { %2804 = vadd.xlane.f32.xlu1 %v2803_v24  ;;  %v2799_v6 = vpop.xlane.xlu1 %2798 }
0x15e6   :  { %3715 = vrsqrt.f32 %v2810_v10  ;;  %v2807_v34 = vmul.f32 0.03125, %v2799_v6 }
0x15e8   :  { %v2811_v26 = vadd.f32 1e-05, %v2807_v34 }
0x15ea   :  { %3717 = vrsqrt.f32 %v2811_v26 }
0x15f0   :  { %v3716_v32 = vpop.eup %3715 }
0x15f1   :  { %v2818_v29 = vmul.f32 %v3716_v32, %v2786_v16 }
0x15f3   :  { %v2828_v18 = vmul.f32 %v3150_v31, %v2818_v29 }
0x15f4   :  { %v3718_v40 = vpop.eup %3717 }
0x15f5   :  { %v2819_v14 = vmul.f32 %v3718_v40, %v2787_v28  ;;  %v2838_v62 = vadd.f32 %v3151_v1, %v2828_v18 }
0x15f7   :  { %v2829_v60 = vmul.f32 %v3150_v31, %v2819_v14 }
0x15f9   :  { %v2839_v21 = vadd.f32 %v3151_v1, %v2829_v60 }
0x15fb   :  { %v2842_v25 = vpack.c.bf16 %v2839_v21, %v2838_v62 }
0x15fd   :  { %3454 = vmatprep.mubr.msk.bf16.mxu0 %vm151_vm0, %v2842_v25 }
0x166e   :  { %v2802_v5 = vpop.xlane.xlu0 %2801 }
0x166f   :  { %v2808_v54 = vmul.f32 0.03125, %v2802_v5 }
0x1671   :  { %v2812_v56 = vadd.f32 1e-05, %v2808_v54 }
0x1672   :  { %v2805_v45 = vpop.xlane.xlu1 %2804 }
0x1673   :  { %3719 = vrsqrt.f32 %v2812_v56  ;;  %v2809_v46 = vmul.f32 0.03125, %v2805_v45 }
0x1675   :  { %v2813_v43 = vadd.f32 1e-05, %v2809_v46 }
0x1677   :  { %3721 = vrsqrt.f32 %v2813_v43 }
0x167d   :  { %v3720_v35 = vpop.eup %3719 }
0x167e   :  { %v2820_v63 = vmul.f32 %v3720_v35, %v2788_v39 }
0x1680   :  { %v2830_v30 = vmul.f32 %v3150_v31, %v2820_v63 }
0x1681   :  { %v3722_v22 = vpop.eup %3721 }
0x1682   :  { %v2821_v57 = vmul.f32 %v3722_v22, %v2789_v19  ;;  %v2840_v41 = vadd.f32 %v3151_v1, %v2830_v30 }
0x1684   :  { %v2831_v33 = vmul.f32 %v3150_v31, %v2821_v57 }
0x1686   :  { %v2841_v2 = vadd.f32 %v3151_v1, %v2831_v33 }
0x1688   :  { %v2843_v7 = vpack.c.bf16 %v2841_v2, %v2840_v41 }
0x168a   :  { %3455 = vmatmul.mubr.msk.bf16.vlgmr.msra.gmra.mrb[40].mxu0 %vm151_vm0, %v2843_v7 }
0x175d   :  { %v3456_v48 = vpop.f32.mrb[40].mxu0 }
0x175e   :  { %v2916_v3 = vadd.f32 %v3456_v48, %v3152_v9  ;;  %v2907_v11 = vpop.f32.mrb[41].mxu0 }
0x175f   :  { %v2908_v16 = vadd.f32 %v3152_v9, %v2907_v11  ;;  %v3457_v59 = vpop.f32.mrb[42].mxu0 }
0x1760   :  { %v2919_v28 = vadd.f32 %v3457_v59, %v3152_v9  ;;  %v2910_v49 = vpop.f32.mrb[43].mxu0  ;;  %v2924_v36 = vmax.f32 %v2916_v3, 0.0 }
0x1761   :  { %v2911_v50 = vadd.f32 %v3152_v9, %v2910_v49  ;;  %v2922_v27 = vmax.f32 %v2908_v16, 0.0 }
0x1762   :  { %v2925_v23 = vmax.f32 %v2919_v28, 0.0 }
0x1763   :  { %v2923_v38 = vmax.f32 %v2911_v50, 0.0 }
0x1764   :  { %v2927_v61 = vpack.c.bf16 %v2925_v23, %v2924_v36 }
0x1765   :  { %v2926_v39 = vpack.c.bf16 %v2923_v38, %v2922_v27 }
0x1767   :  { %3466 = vmatprep.mubr.msk.bf16.mxu1 %vm2967_vm6, %v2926_v39 }
0x1768   :  { %3467 = vmatmul.mubr.msk.bf16.vlgmr.msra.gmra.mrb[36].mxu1 %vm2967_vm6, %v2927_v61 }
0x183b   :  { %v3468_v13 = vpop.f32.mrb[36].mxu1 }
0x183c   :  { %v3017_v20 = vadd.f32 %v3468_v13, %v3157_v17  ;;  %v3008_v19 = vpop.f32.mrb[37].mxu1 }
0x183d   :  { %v3009_v37 = vadd.f32 %v3157_v17, %v3008_v19  ;;  %v3469_v42 = vpop.f32.mrb[38].mxu1 }
0x183e   :  { %v3025_v44 = vadd.f32 %v3017_v20, %v4636_v0  ;;  %v3020_v12 = vadd.f32 %v3469_v42, %v3157_v17  ;;  %v3011_v10 = vpop.f32.mrb[39].mxu1 }
0x183f   :  { %v3023_v24 = vadd.f32 %v3009_v37, %v4618_v53  ;;  %v3012_v6 = vadd.f32 %v3157_v17, %v3011_v10 }
0x1840   :  { %3029 = vst.msk [vmem:[#allocation15 + $0x10] sm:$0xff] %vm151_vm0, %v3025_v44  ;;  %v3026_v34 = vadd.f32 %v3020_v12, %v4641_v15 }
0x1841   :  { %3027 = vst.msk [vmem:[#allocation15] sm:$0xff] %vm151_vm0, %v3023_v24  ;;  %v3024_v26 = vadd.f32 %v3012_v6, %v4620_v58 }
0x1842   :  { %3030 = vst.msk [vmem:[#allocation15 + $0x18] sm:$0xff] %vm151_vm0, %v3026_v34 }
0x1843   :  { %3028 = vst.msk [vmem:[#allocation15 + $0x8] sm:$0xff] %vm151_vm0, %v3024_v26 }
0x1844   :  { %3870 = shalt.err (!%p3867_p10)
}
0x1845   :  { %s4746_s22 = sld [smem:[#allocation27_spill]] }
0x184b   :  { %s3871_s19 = scalar_lea.hbm %s4746_s22, 512 }
0x184c   :  { %p3872_p11 = scmp.ne.s32.totalorder %s4746_s22, %s3871_s19  ;;  %p3875_p12 = scmp.lt.u32.totalorder %s3871_s19, %s4746_s22 }
0x184e   :  { %p3877_p13 = pnand %p3875_p12, %p3872_p11 }
0x1850   :  { %3880 = shalt.err (!%p3877_p13)
}
0x1851   :  { %s3908_s23 = smov 128   ;;  %s3909_s5 = smov 8  }
0x1852   :  { %3042 = dma.vmem_to_hbm [thread:$0]  %s3037_s10, 512, %s4746_s22, [#allocation6], %s3908_s23, %s3908_s23, %s3909_s5  }
0x1853   :  { %3889 = dma.done.wait [#allocation6], 512  }
0x1854   :  { %3890 = vsyncadd [#allocation6], 4294966784 }
0x1855   :  { %3046 = vsyncpa [#allocation5], 1 }
0x1856   :  { %3047 = vsyncpa [#allocation8], 1 }
0x1857   :  { %3048 = vsyncpa [#allocation11], 1 }
0x1858   :  { %3049 = vsyncpa [#allocation14], 1 }
0x1859   :  { %3050 = vsyncpa [#allocation6], 1 }

</bundles_post_ra>
